<compile_context>
chip_gen: v7x
topology: tpu7x:2x2x1
jax: 0.10.0
libtpu: 0.0.40
codegen_flags: <defaults>
</compile_context>

<pallas_src>
import jax
import jax.numpy as jnp
from jax.experimental import pallas as pl
from jax.experimental.pallas import tpu as pltpu


_VMEM_LIMIT = 48 * 1024 * 1024  # < v7x 64 MiB physical, > v6e/v7x 32 MiB default


def _mosaic(sem):
    return pltpu.CompilerParams(dimension_semantics=sem,
                                vmem_limit_bytes=_VMEM_LIMIT)


def _pick_tile(n, candidates):
    for t in candidates:
        if n % t == 0:
            return t
    return n


# ---------------------------------------------------------------------------
# Kernel 1: fused theta/phi/g 1x1-conv projections.
# Per (batch, spatial-tile): stacked W (3Cb, C) @ x (C, TN) -> (3Cb, TN),
# split into three bf16 outputs (Cb % 16 guaranteed -> fully packed stores).
# ---------------------------------------------------------------------------
def proj_kernel(x_ref, w_ref, b_ref, theta_ref, phi_ref, g_ref):
    cb = theta_ref.shape[1]
    xb = x_ref[0].astype(jnp.bfloat16)                                # (C, TN)
    y = jnp.dot(w_ref[...], xb,
                preferred_element_type=jnp.float32) + b_ref[...]     # (3Cb, TN)
    theta_ref[0] = y[:cb].astype(theta_ref.dtype)
    phi_ref[0] = y[cb:2 * cb].astype(phi_ref.dtype)
    g_ref[0] = y[2 * cb:].astype(g_ref.dtype)


# ---------------------------------------------------------------------------
# Kernel 2a: per-column softmax stats (softmax is over torch dim=1 == rows).
# Reduction over i-tiles into VMEM-scratch running max / rescaled sum; emits
# ls[j] = max_i s[i,j] + log(sum_i exp(s[i,j] - max)) at the last i-tile.
# ---------------------------------------------------------------------------
def stats_kernel(theta_ref, phi_ref, ls_ref, m_ref, d_ref):
    it = pl.program_id(1)

    @pl.when(it == 0)
    def _():
        m_ref[...] = jnp.full_like(m_ref, -jnp.inf)
        d_ref[...] = jnp.zeros_like(d_ref)

    s = jnp.dot(theta_ref[0], phi_ref[0],
                preferred_element_type=jnp.float32)                  # (TI, N)
    m_old = m_ref[...]
    m_new = jnp.maximum(m_old, jnp.max(s, axis=0, keepdims=True))
    d_ref[...] = (d_ref[...] * jnp.exp(m_old - m_new)
                  + jnp.sum(jnp.exp(s - m_new), axis=0, keepdims=True))
    m_ref[...] = m_new

    @pl.when(it == pl.num_programs(1) - 1)
    def _():
        ls_ref[0] = m_ref[...] + jnp.log(d_ref[...])


# ---------------------------------------------------------------------------
# Kernel 2b: normalize + p @ g for one (TI, Cb) output tile.
# p = exp(s - ls): log-sum-exp folded into the exponent (no reciprocal, no
# extra full-tile VPU multiply).
# ---------------------------------------------------------------------------
def apply_kernel(theta_ref, phi_ref, g_ref, ls_ref, out_ref):
    s = jnp.dot(theta_ref[0], phi_ref[0],
                preferred_element_type=jnp.float32)                  # (TI, N)
    p = jnp.exp(s - ls_ref[0]).astype(jnp.bfloat16)
    out_ref[0] = jnp.dot(p, g_ref[0],
                         preferred_element_type=jnp.float32).astype(out_ref.dtype)


# ---------------------------------------------------------------------------
# Kernel 3: output 1x1 conv (W) + residual add.
# ---------------------------------------------------------------------------
def out_kernel(y_ref, x_ref, w_ref, b_ref, z_ref):
    z = jnp.dot(w_ref[...], y_ref[0], preferred_element_type=jnp.float32)
    z_ref[0] = z + b_ref[...] + x_ref[0]


def non_local_block(x, params):
    """x: (B, C, H, W) float32 (NCHW). params: dict of conv weights/biases."""
    B, C, H, W = x.shape
    if C % 2 != 0:
        raise ValueError("in_channels must be even")
    Cb = C // 2
    if Cb % 16 != 0:
        raise ValueError("bottleneck channels must be a multiple of 16 "
                         "(bf16 sublane packing of the projection outputs)")
    N = H * W

    bf16 = jnp.bfloat16
    x_flat = x.reshape(B, C, N)

    # Stack the three projection weights -> one MXU pass in kernel 1.
    w_stack = jnp.concatenate(
        [params["theta_w"], params["phi_w"], params["g_w"]], axis=0).astype(bf16)
    b_stack = jnp.concatenate(
        [params["theta_b"], params["phi_b"], params["g_b"]], axis=0
    ).reshape(3 * Cb, 1).astype(jnp.float32)
    Ww = params["W_w"].astype(bf16)
    Wb = params["W_b"].reshape(C, 1).astype(jnp.float32)

    # Spatial tile for the HBM-bound projection / output-conv kernels.
    TN = _pick_tile(N, (2048, 1024, 512, 256, 128))
    # Row tile for the attention kernels; bound the (TI, N) score temporary.
    ti_candidates = (128, 64, 32, 16, 8) if N > 4096 else (256, 128, 64, 32, 16, 8)
    TI = _pick_tile(N, ti_candidates)
    if TI == N and N > 512:
        raise ValueError(
            f"H*W={N} has no row-tile divisor <= {ti_candidates[0]}; pad the "
            "feature map so the attention never materializes an (N, N) tile")

    # ---- Kernel 1: fused projections, grid (B, N/TN) ------------------------
    theta, phi, g = pl.pallas_call(
        proj_kernel,
        out_shape=(jax.ShapeDtypeStruct((B, Cb, N), bf16),) * 3,
        grid=(B, N // TN),
        in_specs=[pl.BlockSpec((1, C, TN), lambda b, n: (b, 0, n)),
                  pl.BlockSpec((3 * Cb, C), lambda b, n: (0, 0)),
                  pl.BlockSpec((3 * Cb, 1), lambda b, n: (0, 0))],
        out_specs=[pl.BlockSpec((1, Cb, TN), lambda b, n: (b, 0, n))] * 3,
        compiler_params=_mosaic(("parallel", "parallel")),
    )(x_flat, w_stack, b_stack)

    # Raw reshapes, identical to torch.reshape on NCHW-contiguous tensors.
    theta_r = theta.reshape(B, N, Cb)
    g_r = g.reshape(B, N, Cb)

    # Zero-pad the bottleneck dim to a lane-dense multiple of 128 for the
    # attention kernels (zeros change neither theta@phi nor the kept p@g cols).
    Cbp = ((Cb + 127) // 128) * 128
    if Cbp != Cb:
        pad_c = Cbp - Cb
        theta_r = jnp.pad(theta_r, ((0, 0), (0, 0), (0, pad_c)))
        g_r = jnp.pad(g_r, ((0, 0), (0, 0), (0, pad_c)))
        phi_p = jnp.pad(phi, ((0, 0), (0, pad_c), (0, 0)))
    else:
        phi_p = phi

    n_i = N // TI

    # ---- Kernel 2a: per-column log-sum-exp, grid (B, N/TI) ------------------
    ls = pl.pallas_call(
        stats_kernel,
        out_shape=jax.ShapeDtypeStruct((B, 1, N), jnp.float32),
        grid=(B, n_i),
        in_specs=[pl.BlockSpec((1, TI, Cbp), lambda b, i: (b, i, 0)),
                  pl.BlockSpec((1, Cbp, N), lambda b, i: (b, 0, 0))],
        out_specs=pl.BlockSpec((1, 1, N), lambda b, i: (b, 0, 0)),
        scratch_shapes=[pltpu.VMEM((1, N), jnp.float32),
                        pltpu.VMEM((1, N), jnp.float32)],
        compiler_params=_mosaic(("parallel", "arbitrary")),
    )(theta_r, phi_p)

    # ---- Kernel 2b: normalize + p @ g, grid (B, N/TI), fully parallel -------
    attn = pl.pallas_call(
        apply_kernel,
        out_shape=jax.ShapeDtypeStruct((B, N, Cbp), bf16),
        grid=(B, n_i),
        in_specs=[pl.BlockSpec((1, TI, Cbp), lambda b, i: (b, i, 0)),
                  pl.BlockSpec((1, Cbp, N), lambda b, i: (b, 0, 0)),
                  pl.BlockSpec((1, N, Cbp), lambda b, i: (b, 0, 0)),
                  pl.BlockSpec((1, 1, N), lambda b, i: (b, 0, 0))],
        out_specs=pl.BlockSpec((1, TI, Cbp), lambda b, i: (b, i, 0)),
        compiler_params=_mosaic(("parallel", "parallel")),
    )(theta_r, phi_p, g_r, ls)

    # Drop channel padding, then raw reshape back to channel-first
    # (identical to torch.reshape on the contiguous (N, Cb) buffer).
    attn_flat = attn[:, :, :Cb].reshape(B, Cb, N)

    # ---- Kernel 3: W conv + residual, grid (B, N/TN) ------------------------
    z = pl.pallas_call(
        out_kernel,
        out_shape=jax.ShapeDtypeStruct((B, C, N), jnp.float32),
        grid=(B, N // TN),
        in_specs=[pl.BlockSpec((1, Cb, TN), lambda b, n: (b, 0, n)),
                  pl.BlockSpec((1, C, TN), lambda b, n: (b, 0, n)),
                  pl.BlockSpec((C, Cb), lambda b, n: (0, 0)),
                  pl.BlockSpec((C, 1), lambda b, n: (0, 0))],
        out_specs=pl.BlockSpec((1, C, TN), lambda b, n: (b, 0, n)),
        compiler_params=_mosaic(("parallel", "parallel")),
    )(attn_flat, x_flat, Ww, Wb)

    return z.reshape(B, C, H, W)


# ---------------------------------------------------------------------------
# Pure-JAX fp32 reference (mirrors the PyTorch forward exactly).
# ---------------------------------------------------------------------------
def ref_forward(x, params):
    B, C, H, W = x.shape
    Cb = C // 2
    hi = jax.lax.Precision.HIGHEST

    def conv1x1(inp, w, b):
        return (jnp.einsum("oc,bchw->bohw", w, inp, precision=hi)
                + b[None, :, None, None])

    theta = conv1x1(x, params["theta_w"], params["theta_b"]).reshape(B, -1, Cb)
    phi = conv1x1(x, params["phi_w"], params["phi_b"]).reshape(B, Cb, -1)
    g = conv1x1(x, params["g_w"], params["g_b"]).reshape(B, -1, Cb)
    tp = jnp.einsum("bij,bjk->bik", theta, phi, precision=hi)
    tp = jax.nn.softmax(tp, axis=1)          # dim=1, as in the torch module
    tpg = jnp.einsum("bij,bjk->bik", tp, g, precision=hi)
    tpg = tpg.reshape(B, -1, H, W)
    w_out = conv1x1(tpg, params["W_w"], params["W_b"])
    return w_out + x


def init_params(key, C):
    Cb = C // 2
    ks = jax.random.split(key, 8)
    return {
        "theta_w": jax.random.normal(ks[0], (Cb, C), jnp.float32) * 0.1,
        "theta_b": jax.random.normal(ks[1], (Cb,), jnp.float32) * 0.01,
        "phi_w": jax.random.normal(ks[2], (Cb, C), jnp.float32) * 0.1,
        "phi_b": jax.random.normal(ks[3], (Cb,), jnp.float32) * 0.01,
        "g_w": jax.random.normal(ks[4], (Cb, C), jnp.float32) * 0.1,
        "g_b": jax.random.normal(ks[5], (Cb,), jnp.float32) * 0.01,
        "W_w": jax.random.normal(ks[6], (C, Cb), jnp.float32) * 0.1,
        "W_b": jax.random.normal(ks[7], (C,), jnp.float32) * 0.01,
    }


if __name__ == "__main__":
    key = jax.random.PRNGKey(0)
    kx, kp = jax.random.split(key)

    # in_channels=32 -> bottleneck=16 (bf16 sublane-packed); H=W=16 -> N=256.
    B, C, H, W = 2, 32, 16, 16
    x = jax.random.normal(kx, (B, C, H, W), jnp.float32)
    params = init_params(kp, C)

    z = jax.jit(non_local_block)(x, params)
    z = jax.block_until_ready(z)

    z_ref = ref_forward(x, params)
    assert z.shape == z_ref.shape
    max_err = float(jnp.max(jnp.abs(z - z_ref)))
    # bf16 MXU operands with fp32 accumulation vs fp32/HIGHEST reference.
    assert max_err < 3e-2, f"max abs error too large: {max_err}"
    print("KERNEL_OK")
</pallas_src>

<mosaic_0001>
module attributes {stable_mosaic.version = 11 : i64} {
  func.func @proj_kernel(%arg0: i32, %arg1: i32, %arg2: memref<1x32x256xf32, #tpu.memory_space<vmem>>, %arg3: memref<48x32xbf16, #tpu.memory_space<vmem>>, %arg4: memref<48x1xf32, #tpu.memory_space<vmem>>, %arg5: memref<1x16x256xbf16, #tpu.memory_space<vmem>>, %arg6: memref<1x16x256xbf16, #tpu.memory_space<vmem>>, %arg7: memref<1x16x256xbf16, #tpu.memory_space<vmem>>) attributes {dimension_semantics = [#tpu.dimension_semantics<parallel>, #tpu.dimension_semantics<parallel>], iteration_bounds = array<i64: 2, 1>, scalar_prefetch = 0 : i64, scratch_operands = 0 : i64, tpu.core_type = #tpu.core_type<tc>, window_params = [{transform_indices = @transform_0, window_bounds = array<i64: 1, 32, 256>}, {pipeline_mode = #tpu.pipeline_mode<synchronous>, transform_indices = @transform_1, window_bounds = array<i64: 48, 32>}, {pipeline_mode = #tpu.pipeline_mode<synchronous>, transform_indices = @transform_2, window_bounds = array<i64: 48, 1>}, {transform_indices = @transform_3, window_bounds = array<i64: 1, 16, 256>}, {transform_indices = @transform_4, window_bounds = array<i64: 1, 16, 256>}, {transform_indices = @transform_5, window_bounds = array<i64: 1, 16, 256>}]} {
    %c0 = arith.constant 0 : index
    %c0_0 = arith.constant 0 : index
    %c0_1 = arith.constant 0 : index
    %0 = vector.load %arg2[%c0, %c0_0, %c0_1] : memref<1x32x256xf32, #tpu.memory_space<vmem>>, vector<1x32x256xf32>
    %1 = vector.shape_cast %0 : vector<1x32x256xf32> to vector<32x256xf32>
    %2 = arith.truncf %1 : vector<32x256xf32> to vector<32x256xbf16>
    %c0_2 = arith.constant 0 : index
    %c0_3 = arith.constant 0 : index
    %3 = vector.load %arg3[%c0_2, %c0_3] : memref<48x32xbf16, #tpu.memory_space<vmem>>, vector<48x32xbf16>
    %cst = arith.constant dense<0.000000e+00> : vector<48x256xf32>
    %4 = tpu.matmul %3, %2, %cst {dimension_numbers = #tpu.dot_dimension_numbers<[1], [0], [0], [1], [0, 0, 1, 1], [], []>} : vector<48x32xbf16>, vector<32x256xbf16>, vector<48x256xf32> -> vector<48x256xf32>
    %c0_4 = arith.constant 0 : index
    %c0_5 = arith.constant 0 : index
    %5 = vector.load %arg4[%c0_4, %c0_5] : memref<48x1xf32, #tpu.memory_space<vmem>>, vector<48x1xf32>
    %6 = vector.broadcast %5 : vector<48x1xf32> to vector<48x256xf32>
    %7 = arith.addf %4, %6 : vector<48x256xf32>
    %8 = vector.extract_strided_slice %7 {offsets = [0, 0], sizes = [16, 256], strides = [1, 1]} : vector<48x256xf32> to vector<16x256xf32>
    %9 = arith.truncf %8 : vector<16x256xf32> to vector<16x256xbf16>
    %c0_6 = arith.constant 0 : index
    %c0_7 = arith.constant 0 : index
    %c0_8 = arith.constant 0 : index
    %10 = vector.load %arg5[%c0_6, %c0_7, %c0_8] : memref<1x16x256xbf16, #tpu.memory_space<vmem>>, vector<1x16x256xbf16>
    %11 = vector.shape_cast %10 : vector<1x16x256xbf16> to vector<16x256xbf16>
    %12 = vector.shape_cast %9 : vector<16x256xbf16> to vector<1x16x256xbf16>
    tpu.vector_store %arg5[%c0_6, %c0_7, %c0_8], %12 {strides = array<i32>} : memref<1x16x256xbf16, #tpu.memory_space<vmem>>, vector<1x16x256xbf16>,
    %13 = vector.extract_strided_slice %7 {offsets = [16, 0], sizes = [16, 256], strides = [1, 1]} : vector<48x256xf32> to vector<16x256xf32>
    %14 = arith.truncf %13 : vector<16x256xf32> to vector<16x256xbf16>
    %c0_9 = arith.constant 0 : index
    %c0_10 = arith.constant 0 : index
    %c0_11 = arith.constant 0 : index
    %15 = vector.load %arg6[%c0_9, %c0_10, %c0_11] : memref<1x16x256xbf16, #tpu.memory_space<vmem>>, vector<1x16x256xbf16>
    %16 = vector.shape_cast %15 : vector<1x16x256xbf16> to vector<16x256xbf16>
    %17 = vector.shape_cast %14 : vector<16x256xbf16> to vector<1x16x256xbf16>
    tpu.vector_store %arg6[%c0_9, %c0_10, %c0_11], %17 {strides = array<i32>} : memref<1x16x256xbf16, #tpu.memory_space<vmem>>, vector<1x16x256xbf16>,
    %18 = vector.extract_strided_slice %7 {offsets = [32, 0], sizes = [16, 256], strides = [1, 1]} : vector<48x256xf32> to vector<16x256xf32>
    %19 = arith.truncf %18 : vector<16x256xf32> to vector<16x256xbf16>
    %c0_12 = arith.constant 0 : index
    %c0_13 = arith.constant 0 : index
    %c0_14 = arith.constant 0 : index
    %20 = vector.load %arg7[%c0_12, %c0_13, %c0_14] : memref<1x16x256xbf16, #tpu.memory_space<vmem>>, vector<1x16x256xbf16>
    %21 = vector.shape_cast %20 : vector<1x16x256xbf16> to vector<16x256xbf16>
    %22 = vector.shape_cast %19 : vector<16x256xbf16> to vector<1x16x256xbf16>
    tpu.vector_store %arg7[%c0_12, %c0_13, %c0_14], %22 {strides = array<i32>} : memref<1x16x256xbf16, #tpu.memory_space<vmem>>, vector<1x16x256xbf16>,
    return
  }
  func.func @transform_0(%arg0: i32, %arg1: i32) -> (i32, i32, i32) {
    %c0_i32 = arith.constant 0 : i32
    %c0_i32_0 = arith.constant 0 : i32
    return %arg0, %c0_i32, %arg1 : i32, i32, i32
  }
  func.func @transform_1(%arg0: i32, %arg1: i32) -> (i32, i32) {
    %c0_i32 = arith.constant 0 : i32
    %c0_i32_0 = arith.constant 0 : i32
    %c0_i32_1 = arith.constant 0 : i32
    return %c0_i32, %c0_i32_0 : i32, i32
  }
  func.func @transform_2(%arg0: i32, %arg1: i32) -> (i32, i32) {
    %c0_i32 = arith.constant 0 : i32
    %c0_i32_0 = arith.constant 0 : i32
    %c0_i32_1 = arith.constant 0 : i32
    return %c0_i32, %c0_i32_0 : i32, i32
  }
  func.func @transform_3(%arg0: i32, %arg1: i32) -> (i32, i32, i32) {
    %c0_i32 = arith.constant 0 : i32
    %c0_i32_0 = arith.constant 0 : i32
    return %arg0, %c0_i32, %arg1 : i32, i32, i32
  }
  func.func @transform_4(%arg0: i32, %arg1: i32) -> (i32, i32, i32) {
    %c0_i32 = arith.constant 0 : i32
    %c0_i32_0 = arith.constant 0 : i32
    return %arg0, %c0_i32, %arg1 : i32, i32, i32
  }
  func.func @transform_5(%arg0: i32, %arg1: i32) -> (i32, i32, i32) {
    %c0_i32 = arith.constant 0 : i32
    %c0_i32_0 = arith.constant 0 : i32
    return %arg0, %c0_i32, %arg1 : i32, i32, i32
  }
}

module attributes {stable_mosaic.version = 11 : i64} {
  func.func @stats_kernel(%arg0: i32, %arg1: i32, %arg2: memref<1x256x128xbf16, #tpu.memory_space<vmem>>, %arg3: memref<1x128x256xbf16, #tpu.memory_space<vmem>>, %arg4: memref<1x1x256xf32, #tpu.memory_space<vmem>>, %arg5: memref<1x256xf32, #tpu.memory_space<vmem>>, %arg6: memref<1x256xf32, #tpu.memory_space<vmem>>) attributes {dimension_semantics = [#tpu.dimension_semantics<parallel>, #tpu.dimension_semantics<arbitrary>], iteration_bounds = array<i64: 2, 1>, scalar_prefetch = 0 : i64, scratch_operands = 2 : i64, tpu.core_type = #tpu.core_type<tc>, window_params = [{transform_indices = @transform_0, window_bounds = array<i64: 1, 256, 128>}, {transform_indices = @transform_1, window_bounds = array<i64: 1, 128, 256>}, {transform_indices = @transform_2, window_bounds = array<i64: 1, 1, 256>}]} {
    %c0_i32 = arith.constant 0 : i32
    %0 = arith.cmpi eq, %arg1, %c0_i32 : i32
    %1 = arith.extui %0 : i1 to i32
    %c0_i32_0 = arith.constant 0 : i32
    %2 = arith.cmpi ne, %1, %c0_i32_0 : i32
    scf.if %2 {
      %cst_18 = arith.constant 0xFF800000 : f32
      %27 = vector.broadcast %cst_18 : f32 to vector<1x256xf32>
      %c0_19 = arith.constant 0 : index
      %c0_20 = arith.constant 0 : index
      %28 = vector.load %arg5[%c0_19, %c0_20] : memref<1x256xf32, #tpu.memory_space<vmem>>, vector<1x256xf32>
      tpu.vector_store %arg5[%c0_19, %c0_20], %27 {strides = array<i32>} : memref<1x256xf32, #tpu.memory_space<vmem>>, vector<1x256xf32>,
      %cst_21 = arith.constant 0.000000e+00 : f32
      %29 = vector.broadcast %cst_21 : f32 to vector<1x256xf32>
      %c0_22 = arith.constant 0 : index
      %c0_23 = arith.constant 0 : index
      %30 = vector.load %arg6[%c0_22, %c0_23] : memref<1x256xf32, #tpu.memory_space<vmem>>, vector<1x256xf32>
      tpu.vector_store %arg6[%c0_22, %c0_23], %29 {strides = array<i32>} : memref<1x256xf32, #tpu.memory_space<vmem>>, vector<1x256xf32>,
    } else {
    }
    %c0 = arith.constant 0 : index
    %c0_1 = arith.constant 0 : index
    %c0_2 = arith.constant 0 : index
    %3 = vector.load %arg2[%c0, %c0_1, %c0_2] : memref<1x256x128xbf16, #tpu.memory_space<vmem>>, vector<1x256x128xbf16>
    %4 = vector.shape_cast %3 : vector<1x256x128xbf16> to vector<256x128xbf16>
    %c0_3 = arith.constant 0 : index
    %c0_4 = arith.constant 0 : index
    %c0_5 = arith.constant 0 : index
    %5 = vector.load %arg3[%c0_3, %c0_4, %c0_5] : memref<1x128x256xbf16, #tpu.memory_space<vmem>>, vector<1x128x256xbf16>
    %6 = vector.shape_cast %5 : vector<1x128x256xbf16> to vector<128x256xbf16>
    %cst = arith.constant dense<0.000000e+00> : vector<256x256xf32>
    %7 = tpu.matmul %4, %6, %cst {dimension_numbers = #tpu.dot_dimension_numbers<[1], [0], [0], [1], [0, 0, 1, 1], [], []>} : vector<256x128xbf16>, vector<128x256xbf16>, vector<256x256xf32> -> vector<256x256xf32>
    %c0_6 = arith.constant 0 : index
    %c0_7 = arith.constant 0 : index
    %8 = vector.load %arg5[%c0_6, %c0_7] : memref<1x256xf32, #tpu.memory_space<vmem>>, vector<1x256xf32>
    %cst_8 = arith.constant dense<0xFF800000> : vector<256xf32>
    %9 = vector.multi_reduction <maximumf>, %7, %cst_8 [0] : vector<256x256xf32> to vector<256xf32>
    %10 = vector.shape_cast %9 : vector<256xf32> to vector<1x256xf32>
    %11 = arith.maximumf %8, %10 : vector<1x256xf32>
    %c0_9 = arith.constant 0 : index
    %c0_10 = arith.constant 0 : index
    %12 = vector.load %arg6[%c0_9, %c0_10] : memref<1x256xf32, #tpu.memory_space<vmem>>, vector<1x256xf32>
    %13 = arith.subf %8, %11 : vector<1x256xf32>
    %14 = math.exp %13 : vector<1x256xf32>
    %15 = arith.mulf %12, %14 : vector<1x256xf32>
    %16 = vector.broadcast %11 : vector<1x256xf32> to vector<256x256xf32>
    %17 = arith.subf %7, %16 : vector<256x256xf32>
    %18 = math.exp %17 : vector<256x256xf32>
    %cst_11 = arith.constant dense<0.000000e+00> : vector<256xf32>
    %19 = vector.multi_reduction <add>, %18, %cst_11 [0] : vector<256x256xf32> to vector<256xf32>
    %20 = vector.shape_cast %19 : vector<256xf32> to vector<1x256xf32>
    %21 = arith.addf %15, %20 : vector<1x256xf32>
    %c0_12 = arith.constant 0 : index
    %c0_13 = arith.constant 0 : index
    %22 = vector.load %arg6[%c0_12, %c0_13] : memref<1x256xf32, #tpu.memory_space<vmem>>, vector<1x256xf32>
    tpu.vector_store %arg6[%c0_12, %c0_13], %21 {strides = array<i32>} : memref<1x256xf32, #tpu.memory_space<vmem>>, vector<1x256xf32>,
    %c0_14 = arith.constant 0 : index
    %c0_15 = arith.constant 0 : index
    %23 = vector.load %arg5[%c0_14, %c0_15] : memref<1x256xf32, #tpu.memory_space<vmem>>, vector<1x256xf32>
    tpu.vector_store %arg5[%c0_14, %c0_15], %11 {strides = array<i32>} : memref<1x256xf32, #tpu.memory_space<vmem>>, vector<1x256xf32>,
    %c0_i32_16 = arith.constant 0 : i32
    %24 = arith.cmpi eq, %arg1, %c0_i32_16 : i32
    %25 = arith.extui %24 : i1 to i32
    %c0_i32_17 = arith.constant 0 : i32
    %26 = arith.cmpi ne, %25, %c0_i32_17 : i32
    scf.if %26 {
      %c0_18 = arith.constant 0 : index
      %c0_19 = arith.constant 0 : index
      %27 = vector.load %arg5[%c0_18, %c0_19] : memref<1x256xf32, #tpu.memory_space<vmem>>, vector<1x256xf32>
      %c0_20 = arith.constant 0 : index
      %c0_21 = arith.constant 0 : index
      %28 = vector.load %arg6[%c0_20, %c0_21] : memref<1x256xf32, #tpu.memory_space<vmem>>, vector<1x256xf32>
      %29 = math.log %28 : vector<1x256xf32>
      %30 = arith.addf %27, %29 : vector<1x256xf32>
      %c0_22 = arith.constant 0 : index
      %c0_23 = arith.constant 0 : index
      %c0_24 = arith.constant 0 : index
      %31 = vector.load %arg4[%c0_22, %c0_23, %c0_24] : memref<1x1x256xf32, #tpu.memory_space<vmem>>, vector<1x1x256xf32>
      %32 = vector.shape_cast %31 : vector<1x1x256xf32> to vector<1x256xf32>
      %33 = vector.shape_cast %30 : vector<1x256xf32> to vector<1x1x256xf32>
      tpu.vector_store %arg4[%c0_22, %c0_23, %c0_24], %33 {strides = array<i32>} : memref<1x1x256xf32, #tpu.memory_space<vmem>>, vector<1x1x256xf32>,
    } else {
    }
    return
  }
  func.func @transform_0(%arg0: i32, %arg1: i32) -> (i32, i32, i32) {
    %c0_i32 = arith.constant 0 : i32
    %c0_i32_0 = arith.constant 0 : i32
    return %arg0, %arg1, %c0_i32 : i32, i32, i32
  }
  func.func @transform_1(%arg0: i32, %arg1: i32) -> (i32, i32, i32) {
    %c0_i32 = arith.constant 0 : i32
    %c0_i32_0 = arith.constant 0 : i32
    %c0_i32_1 = arith.constant 0 : i32
    return %arg0, %c0_i32, %c0_i32_0 : i32, i32, i32
  }
  func.func @transform_2(%arg0: i32, %arg1: i32) -> (i32, i32, i32) {
    %c0_i32 = arith.constant 0 : i32
    %c0_i32_0 = arith.constant 0 : i32
    %c0_i32_1 = arith.constant 0 : i32
    return %arg0, %c0_i32, %c0_i32_0 : i32, i32, i32
  }
}

module attributes {stable_mosaic.version = 11 : i64} {
  func.func @apply_kernel(%arg0: i32, %arg1: i32, %arg2: memref<1x256x128xbf16, #tpu.memory_space<vmem>>, %arg3: memref<1x128x256xbf16, #tpu.memory_space<vmem>>, %arg4: memref<1x256x128xbf16, #tpu.memory_space<vmem>>, %arg5: memref<1x1x256xf32, #tpu.memory_space<vmem>>, %arg6: memref<1x256x128xbf16, #tpu.memory_space<vmem>>) attributes {dimension_semantics = [#tpu.dimension_semantics<parallel>, #tpu.dimension_semantics<parallel>], iteration_bounds = array<i64: 2, 1>, scalar_prefetch = 0 : i64, scratch_operands = 0 : i64, tpu.core_type = #tpu.core_type<tc>, window_params = [{transform_indices = @transform_0, window_bounds = array<i64: 1, 256, 128>}, {transform_indices = @transform_1, window_bounds = array<i64: 1, 128, 256>}, {transform_indices = @transform_2, window_bounds = array<i64: 1, 256, 128>}, {transform_indices = @transform_3, window_bounds = array<i64: 1, 1, 256>}, {transform_indices = @transform_4, window_bounds = array<i64: 1, 256, 128>}]} {
    %c0 = arith.constant 0 : index
    %c0_0 = arith.constant 0 : index
    %c0_1 = arith.constant 0 : index
    %0 = vector.load %arg2[%c0, %c0_0, %c0_1] : memref<1x256x128xbf16, #tpu.memory_space<vmem>>, vector<1x256x128xbf16>
    %1 = vector.shape_cast %0 : vector<1x256x128xbf16> to vector<256x128xbf16>
    %c0_2 = arith.constant 0 : index
    %c0_3 = arith.constant 0 : index
    %c0_4 = arith.constant 0 : index
    %2 = vector.load %arg3[%c0_2, %c0_3, %c0_4] : memref<1x128x256xbf16, #tpu.memory_space<vmem>>, vector<1x128x256xbf16>
    %3 = vector.shape_cast %2 : vector<1x128x256xbf16> to vector<128x256xbf16>
    %cst = arith.constant dense<0.000000e+00> : vector<256x256xf32>
    %4 = tpu.matmul %1, %3, %cst {dimension_numbers = #tpu.dot_dimension_numbers<[1], [0], [0], [1], [0, 0, 1, 1], [], []>} : vector<256x128xbf16>, vector<128x256xbf16>, vector<256x256xf32> -> vector<256x256xf32>
    %c0_5 = arith.constant 0 : index
    %c0_6 = arith.constant 0 : index
    %c0_7 = arith.constant 0 : index
    %5 = vector.load %arg5[%c0_5, %c0_6, %c0_7] : memref<1x1x256xf32, #tpu.memory_space<vmem>>, vector<1x1x256xf32>
    %6 = vector.shape_cast %5 : vector<1x1x256xf32> to vector<1x256xf32>
    %7 = vector.broadcast %6 : vector<1x256xf32> to vector<256x256xf32>
    %8 = arith.subf %4, %7 : vector<256x256xf32>
    %9 = math.exp %8 : vector<256x256xf32>
    %10 = arith.truncf %9 : vector<256x256xf32> to vector<256x256xbf16>
    %c0_8 = arith.constant 0 : index
    %c0_9 = arith.constant 0 : index
    %c0_10 = arith.constant 0 : index
    %11 = vector.load %arg4[%c0_8, %c0_9, %c0_10] : memref<1x256x128xbf16, #tpu.memory_space<vmem>>, vector<1x256x128xbf16>
    %12 = vector.shape_cast %11 : vector<1x256x128xbf16> to vector<256x128xbf16>
    %cst_11 = arith.constant dense<0.000000e+00> : vector<256x128xf32>
    %13 = tpu.matmul %10, %12, %cst_11 {dimension_numbers = #tpu.dot_dimension_numbers<[1], [0], [0], [1], [0, 0, 1, 1], [], []>} : vector<256x256xbf16>, vector<256x128xbf16>, vector<256x128xf32> -> vector<256x128xf32>
    %14 = arith.truncf %13 : vector<256x128xf32> to vector<256x128xbf16>
    %c0_12 = arith.constant 0 : index
    %c0_13 = arith.constant 0 : index
    %c0_14 = arith.constant 0 : index
    %15 = vector.load %arg6[%c0_12, %c0_13, %c0_14] : memref<1x256x128xbf16, #tpu.memory_space<vmem>>, vector<1x256x128xbf16>
    %16 = vector.shape_cast %15 : vector<1x256x128xbf16> to vector<256x128xbf16>
    %17 = vector.shape_cast %14 : vector<256x128xbf16> to vector<1x256x128xbf16>
    tpu.vector_store %arg6[%c0_12, %c0_13, %c0_14], %17 {strides = array<i32>} : memref<1x256x128xbf16, #tpu.memory_space<vmem>>, vector<1x256x128xbf16>,
    return
  }
  func.func @transform_0(%arg0: i32, %arg1: i32) -> (i32, i32, i32) {
    %c0_i32 = arith.constant 0 : i32
    %c0_i32_0 = arith.constant 0 : i32
    return %arg0, %arg1, %c0_i32 : i32, i32, i32
  }
  func.func @transform_1(%arg0: i32, %arg1: i32) -> (i32, i32, i32) {
    %c0_i32 = arith.constant 0 : i32
    %c0_i32_0 = arith.constant 0 : i32
    %c0_i32_1 = arith.constant 0 : i32
    return %arg0, %c0_i32, %c0_i32_0 : i32, i32, i32
  }
  func.func @transform_2(%arg0: i32, %arg1: i32) -> (i32, i32, i32) {
    %c0_i32 = arith.constant 0 : i32
    %c0_i32_0 = arith.constant 0 : i32
    %c0_i32_1 = arith.constant 0 : i32
    return %arg0, %c0_i32, %c0_i32_0 : i32, i32, i32
  }
  func.func @transform_3(%arg0: i32, %arg1: i32) -> (i32, i32, i32) {
    %c0_i32 = arith.constant 0 : i32
    %c0_i32_0 = arith.constant 0 : i32
    %c0_i32_1 = arith.constant 0 : i32
    return %arg0, %c0_i32, %c0_i32_0 : i32, i32, i32
  }
  func.func @transform_4(%arg0: i32, %arg1: i32) -> (i32, i32, i32) {
    %c0_i32 = arith.constant 0 : i32
    %c0_i32_0 = arith.constant 0 : i32
    return %arg0, %arg1, %c0_i32 : i32, i32, i32
  }
}

module attributes {stable_mosaic.version = 11 : i64} {
  func.func @out_kernel(%arg0: i32, %arg1: i32, %arg2: memref<1x16x256xbf16, #tpu.memory_space<vmem>>, %arg3: memref<1x32x256xf32, #tpu.memory_space<vmem>>, %arg4: memref<32x16xbf16, #tpu.memory_space<vmem>>, %arg5: memref<32x1xf32, #tpu.memory_space<vmem>>, %arg6: memref<1x32x256xf32, #tpu.memory_space<vmem>>) attributes {dimension_semantics = [#tpu.dimension_semantics<parallel>, #tpu.dimension_semantics<parallel>], iteration_bounds = array<i64: 2, 1>, scalar_prefetch = 0 : i64, scratch_operands = 0 : i64, tpu.core_type = #tpu.core_type<tc>, window_params = [{transform_indices = @transform_0, window_bounds = array<i64: 1, 16, 256>}, {transform_indices = @transform_1, window_bounds = array<i64: 1, 32, 256>}, {pipeline_mode = #tpu.pipeline_mode<synchronous>, transform_indices = @transform_2, window_bounds = array<i64: 32, 16>}, {pipeline_mode = #tpu.pipeline_mode<synchronous>, transform_indices = @transform_3, window_bounds = array<i64: 32, 1>}, {transform_indices = @transform_4, window_bounds = array<i64: 1, 32, 256>}]} {
    %c0 = arith.constant 0 : index
    %c0_0 = arith.constant 0 : index
    %0 = vector.load %arg4[%c0, %c0_0] : memref<32x16xbf16, #tpu.memory_space<vmem>>, vector<32x16xbf16>
    %c0_1 = arith.constant 0 : index
    %c0_2 = arith.constant 0 : index
    %c0_3 = arith.constant 0 : index
    %1 = vector.load %arg2[%c0_1, %c0_2, %c0_3] : memref<1x16x256xbf16, #tpu.memory_space<vmem>>, vector<1x16x256xbf16>
    %2 = vector.shape_cast %1 : vector<1x16x256xbf16> to vector<16x256xbf16>
    %cst = arith.constant dense<0.000000e+00> : vector<32x256xf32>
    %3 = tpu.matmul %0, %2, %cst {dimension_numbers = #tpu.dot_dimension_numbers<[1], [0], [0], [1], [0, 0, 1, 1], [], []>} : vector<32x16xbf16>, vector<16x256xbf16>, vector<32x256xf32> -> vector<32x256xf32>
    %c0_4 = arith.constant 0 : index
    %c0_5 = arith.constant 0 : index
    %4 = vector.load %arg5[%c0_4, %c0_5] : memref<32x1xf32, #tpu.memory_space<vmem>>, vector<32x1xf32>
    %5 = vector.broadcast %4 : vector<32x1xf32> to vector<32x256xf32>
    %6 = arith.addf %3, %5 : vector<32x256xf32>
    %c0_6 = arith.constant 0 : index
    %c0_7 = arith.constant 0 : index
    %c0_8 = arith.constant 0 : index
    %7 = vector.load %arg3[%c0_6, %c0_7, %c0_8] : memref<1x32x256xf32, #tpu.memory_space<vmem>>, vector<1x32x256xf32>
    %8 = vector.shape_cast %7 : vector<1x32x256xf32> to vector<32x256xf32>
    %9 = arith.addf %6, %8 : vector<32x256xf32>
    %c0_9 = arith.constant 0 : index
    %c0_10 = arith.constant 0 : index
    %c0_11 = arith.constant 0 : index
    %10 = vector.load %arg6[%c0_9, %c0_10, %c0_11] : memref<1x32x256xf32, #tpu.memory_space<vmem>>, vector<1x32x256xf32>
    %11 = vector.shape_cast %10 : vector<1x32x256xf32> to vector<32x256xf32>
    %12 = vector.shape_cast %9 : vector<32x256xf32> to vector<1x32x256xf32>
    tpu.vector_store %arg6[%c0_9, %c0_10, %c0_11], %12 {strides = array<i32>} : memref<1x32x256xf32, #tpu.memory_space<vmem>>, vector<1x32x256xf32>,
    return
  }
  func.func @transform_0(%arg0: i32, %arg1: i32) -> (i32, i32, i32) {
    %c0_i32 = arith.constant 0 : i32
    %c0_i32_0 = arith.constant 0 : i32
    return %arg0, %c0_i32, %arg1 : i32, i32, i32
  }
  func.func @transform_1(%arg0: i32, %arg1: i32) -> (i32, i32, i32) {
    %c0_i32 = arith.constant 0 : i32
    %c0_i32_0 = arith.constant 0 : i32
    return %arg0, %c0_i32, %arg1 : i32, i32, i32
  }
  func.func @transform_2(%arg0: i32, %arg1: i32) -> (i32, i32) {
    %c0_i32 = arith.constant 0 : i32
    %c0_i32_0 = arith.constant 0 : i32
    %c0_i32_1 = arith.constant 0 : i32
    return %c0_i32, %c0_i32_0 : i32, i32
  }
  func.func @transform_3(%arg0: i32, %arg1: i32) -> (i32, i32) {
    %c0_i32 = arith.constant 0 : i32
    %c0_i32_0 = arith.constant 0 : i32
    %c0_i32_1 = arith.constant 0 : i32
    return %c0_i32, %c0_i32_0 : i32, i32
  }
  func.func @transform_4(%arg0: i32, %arg1: i32) -> (i32, i32, i32) {
    %c0_i32 = arith.constant 0 : i32
    %c0_i32_0 = arith.constant 0 : i32
    return %arg0, %c0_i32, %arg1 : i32, i32, i32
  }
}

</mosaic_0001>

<bundles_post_ra>
// kernel: non_local_block.4
= control target key start
LH: loop header
LB: loop body
LE: loop exit
PB: predicated region body
PF: predicated region fallthrough
CT: control target
= control target key end

     0   :  { %s809_s18 = smov 0   ;;  %s811_s19 = smov 0   ;;  %s884_s0 = inlined_call_operand.vmem [shape: f32[2,32,256], index: 0, kind: input, shape index: {}]   ;;  %s885_s1 = inlined_call_operand.vmem [shape: bf16[48,32], index: 1, kind: input, shape index: {}]   ;;  %s886_s2 = inlined_call_operand.vmem [shape: f32[48,1], index: 2, kind: input, shape index: {}]   ;;  %s887_s3 = inlined_call_operand.vmem [shape: bf16[2,16,256], index: 3, kind: output, shape index: {0}]   ;;  %s888_s4 = inlined_call_operand.vmem [shape: bf16[2,16,256], index: 4, kind: output, shape index: {1}]   ;;  %s889_s5 = inlined_call_operand.vmem [shape: bf16[2,16,256], index: 5, kind: output, shape index: {2}]  }
   0x1   :  { %s813_s20 = smov 0  }
   0x2 LB: > { %s28_s21 = sadd.s32 1, %s772_s19  ;;  %p687_p0 = scmp.ge.s32.totalorder %s776_s20, 1  ;;  %s776_s20 = sphi %s813_s20, %s16_s20   ;;  %s772_s19 = sphi %s811_s19, %s891_s19   ;;  %s768_s18 = sphi %s809_s18, %s890_s18  }
   0x3   : > { %p30_p1 = scmp.ge.s32.totalorder %s28_s21, 2  ;;  %p217_p2 = scmp.lt.s32.totalorder %s776_s20, 3 }
   0x5   : > { %s893_s21 = smov (%p30_p1, %s28_s21), 0  ;;  %p218_p3 = pnand %p687_p0, %p217_p2 }
   0x6   : > { %p272_p4 = scmp.lt.s32.totalorder (!%p218_p3), %s768_s18, 1  ;;  %v778_v0 = vmov (!%p218_p3), 0   ;;  %v332_v1 = vld [vmem:[%s886_s2 + $0x10] sm:$0xff] (!%p218_p3)  ;;  %v330_v2 = vld [vmem:[%s886_s2] sm:$0xff] (!%p218_p3)  ;;  %v333_v3 = vld [vmem:[%s886_s2 + $0x18] sm:$0xff] (!%p218_p3)  ;;  %vm381_vm0 = vcmask (!%p218_p3), 261120  }
   0x7   : > { %221 = sbr.rel (%p218_p3) target bundleno = 256 (0x100), region = 32  ;;  %423 = vmatprep.mubr.bf16.mxu0 (!%p218_p3), %v778_v0  ;;  %433 = vmatprep.mubr.bf16.mxu1 (!%p218_p3), %v778_v0  ;;  %v331_v4 = vld [vmem:[%s886_s2 + $0x8] sm:$0xff] (!%p218_p3)  ;;  %v334_v17 = vld [vmem:[%s886_s2 + $0x20] sm:$0xff] (!%p218_p3)  ;;  %v753_v21 = vld [vmem:[%s885_s1 + $0x10] sm:$0xff] (!%p218_p3)  }
   0x8   : > { %750 = vset.pattern.permute.xlu1 (!%p218_p3), %v778_v0  ;;  %749 = vset.pattern.permute.xlu0 (!%p218_p3), %v778_v0  ;;  %v335_v16 = vld [vmem:[%s886_s2 + $0x28] sm:$0xff] (!%p218_p3)  ;;  %v751_v19 = vld [vmem:[%s885_s1] sm:$0xff] (!%p218_p3)  }
   0x9   : > { %348 = vperm.xlu1 (!%p218_p3), %750, %v332_v1   ;;  %338 = vperm.xlu0 (!%p218_p3), %749, %v330_v2   ;;  %v752_v20 = vld [vmem:[%s885_s1 + $0x8] sm:$0xff] (!%p218_p3)  }
   0xd   : > { %353 = vperm.xlu1 (!%p218_p3), %750, %v333_v3   ;;  %343 = vperm.xlu0 (!%p218_p3), %749, %v331_v4  }
   0xe   : > { %s895_s18 = smov (!%p272_p4, %s768_s18), 1 }
   0xf   : > { %s710_s26 = sshll.u32 %s895_s18, 6  ;;  %s861_s23 = sshll.u32 %s895_s18, 4 }
  0x10   : > { %s279_s29 = scalar_lea.vmem %s884_s0, %s710_s26  ;;  %s289_s26 = scalar_lea.vmem %s887_s3, %s861_s23 }
  0x11   : > { %v313_v5 = vld [vmem:[%s279_s29 + $0x8] sm:$0xff]  ;;  %v315_v6 = vld [vmem:[%s279_s29 + $0x18] sm:$0xff]  ;;  %v312_v7 = vld [vmem:[%s279_s29] sm:$0xff]  ;;  %363 = vperm.xlu1 %750, %v335_v16   ;;  %358 = vperm.xlu0 %749, %v334_v17   ;;  %s309_s6 = scalar_lea.vmem %s889_s5, %s861_s23 }
  0x12   : > { %v321_v8 = vpack.c.bf16 %v315_v6, %v313_v5  ;;  %v314_v9 = vld [vmem:[%s279_s29 + $0x10] sm:$0xff]  ;;  %v317_v10 = vld [vmem:[%s279_s29 + $0x28] sm:$0xff]  ;;  %v319_v11 = vld [vmem:[%s279_s29 + $0x38] sm:$0xff] }
  0x13   : > { %v320_v12 = vpack.c.bf16 %v314_v9, %v312_v7  ;;  %v323_v13 = vpack.c.bf16 %v319_v11, %v317_v10  ;;  %v316_v14 = vld [vmem:[%s279_s29 + $0x20] sm:$0xff]  ;;  %v318_v15 = vld [vmem:[%s279_s29 + $0x30] sm:$0xff]  ;;  %s299_s29 = scalar_lea.vmem %s888_s4, %s861_s23 }
  0x14   : > { %391 = vmatprep.subr.bf16.mxu0 %v321_v8  ;;  %720 = vmatprep.subr.bf16.mxu1 %v321_v8  ;;  %v322_v18 = vpack.c.bf16 %v318_v15, %v316_v14 }
  0x15   : > { %392 = vmatpush1.bf16.msra.mxu0 %v320_v12  ;;  %722 = vmatpush1.bf16.msra.mxu1 %v320_v12 }
  0x16   : > { %393 = vmatprep.subr.bf16.mxu0 %v323_v13  ;;  %721 = vmatprep.subr.bf16.mxu1 %v323_v13 }
  0x19   : > { %394 = vmatpush1.bf16.msra.mxu0 %v322_v18  ;;  %723 = vmatpush1.bf16.msra.mxu1 %v322_v18 }
  0x1c   : > { %699 = vmatmul.mubr.msk.bf16.vlgmr.msra.gmra.mrb[0].mxu0 %vm381_vm0, %v751_v19  ;;  %700 = vmatmul.mubr.msk.bf16.vlgmr.msra.gmra.mrb[0].mxu1 %vm381_vm0, %v752_v20 }
  0x1d   : > { %443 = vmatprep.mubr.bf16.mxu1 %v778_v0 }
  0x24   : > { %701 = vmatmul.mubr.msk.bf16.gmra.mrb[4].mxu1 %vm381_vm0, %v753_v21 }
  0x88   : > { %v349_v22 = vpop.permute.xlu1 %348  ;;  %v339_v23 = vpop.permute.xlu0 %338 }
  0x8c   : > { %v354_v24 = vpop.permute.xlu1 %353  ;;  %v344_v25 = vpop.permute.xlu0 %343 }
  0x90   : > { %v359_v46 = vpop.permute.xlu0 %358  ;;  %v364_v50 = vpop.permute.xlu1 %363 }
  0xef   : > { %v425_v26 = vpop.f32.mrb[0].mxu0  ;;  %v435_v27 = vpop.f32.mrb[0].mxu1 }
  0xf0   : > { %v426_v28 = vadd.f32 %v425_v26, %v339_v23  ;;  %v436_v29 = vadd.f32 %v435_v27, %v349_v22  ;;  %v427_v30 = vpop.f32.mrb[1].mxu0  ;;  %v437_v31 = vpop.f32.mrb[1].mxu1 }
  0xf1   : > { %v428_v32 = vadd.f32 %v427_v30, %v339_v23  ;;  %v438_v33 = vadd.f32 %v437_v31, %v349_v22  ;;  %v429_v34 = vpop.f32.mrb[2].mxu0  ;;  %v439_v35 = vpop.f32.mrb[2].mxu1 }
  0xf2   : > { %v430_v36 = vadd.f32 %v429_v34, %v344_v25  ;;  %v440_v37 = vadd.f32 %v439_v35, %v354_v24  ;;  %v431_v38 = vpop.f32.mrb[3].mxu0  ;;  %v441_v39 = vpop.f32.mrb[3].mxu1 }
  0xf3   : > { %v714_v40 = vpack.c.bf16 %v428_v32, %v426_v28  ;;  %v716_v41 = vpack.c.bf16 %v438_v33, %v436_v29  ;;  %v432_v42 = vadd.f32 %v431_v38, %v344_v25  ;;  %v442_v43 = vadd.f32 %v441_v39, %v354_v24 }
  0xf5   : > { %466 = vst [vmem:[%s289_s26] sm:$0xff] %v714_v40  ;;  %480 = vst [vmem:[%s299_s29] sm:$0xff] %v716_v41  ;;  %v715_v44 = vpack.c.bf16 %v432_v42, %v430_v36  ;;  %v717_v45 = vpack.c.bf16 %v442_v43, %v440_v37 }
  0xf7   : > { %467 = vst [vmem:[%s289_s26 + $0x8] sm:$0xff] %v715_v44  ;;  %481 = vst [vmem:[%s299_s29 + $0x8] sm:$0xff] %v717_v45  ;;  %v445_v47 = vpop.f32.mrb[4].mxu1 }
  0xf8   : > { %v446_v48 = vadd.f32 %v445_v47, %v359_v46  ;;  %v447_v49 = vpop.f32.mrb[5].mxu1 }
  0xf9   : > { %v448_v51 = vadd.f32 %v447_v49, %v359_v46  ;;  %v449_v52 = vpop.f32.mrb[6].mxu1 }
  0xfa   : > { %v450_v53 = vadd.f32 %v449_v52, %v364_v50  ;;  %v451_v54 = vpop.f32.mrb[7].mxu1 }
  0xfb   : > { %v718_v55 = vpack.c.bf16 %v448_v51, %v446_v48  ;;  %v452_v56 = vadd.f32 %v451_v54, %v364_v50 }
  0xfd   : > { %494 = vst [vmem:[%s309_s6] sm:$0xff] %v718_v55  ;;  %v719_v57 = vpack.c.bf16 %v452_v56, %v450_v53 }
  0xff   : > { %495 = vst [vmem:[%s309_s6 + $0x8] sm:$0xff] %v719_v57 }
 0x100 PF: > { %s16_s20 = sadd.s32 1, %s776_s20   ;;  %s890_s18 = smov %s772_s19 }
 0x101   : > { %p13_p5 = scmp.ge.s32.totalorder %s16_s20, 4   ;;  %s891_s19 = smov %s893_s21 }
 0x103   :  { %15 = sbr.rel (!%p13_p5) target bundleno = 2 (0x2), region = 86 }

// kernel: non_local_block.5
= control target key start
LH: loop header
LB: loop body
LE: loop exit
PB: predicated region body
PF: predicated region fallthrough
CT: control target
= control target key end

     0   :  { %s1412_s9 = smov 0   ;;  %s1414_s10 = smov 0   ;;  %s2055_s0 = inlined_call_operand.vmem [shape: bf16[2,256,128], index: 0, kind: input, shape index: {}]   ;;  %s2056_s1 = inlined_call_operand.vmem [shape: bf16[2,128,256], index: 1, kind: input, shape index: {}]   ;;  %s2057_s2 = inlined_call_operand.vmem [shape: f32[2,1,256], index: 2, kind: output, shape index: {}]  }
   0x1   :  { %s1416_s11 = smov 0  }
   0x2 LB: > { %s24_s12 = sadd.s32 1, %s1387_s10  ;;  %p1111_p0 = scmp.ge.s32.totalorder %s1391_s11, 1  ;;  %s1391_s11 = sphi %s1416_s11, %s12_s11   ;;  %s1387_s10 = sphi %s1414_s10, %s2265_s10   ;;  %s1383_s9 = sphi %s1412_s9, %s2264_s9  }
   0x3   : > { %p26_p1 = scmp.ge.s32.totalorder %s24_s12, 2  ;;  %p141_p2 = scmp.lt.s32.totalorder %s1391_s11, 3 }
   0x5   : > { %s2267_s12 = smov (%p26_p1, %s24_s12), 0  ;;  %p142_p3 = pnand %p1111_p0, %p141_p2 }
   0x7   : > { %145 = sbr.rel (%p142_p3) target bundleno = 489 (0x1e9), region = 28 }
   0xe   : > { %p172_p4 = scmp.lt.s32.totalorder %s1383_s9, 1  ;;  %v1393_v0 = vmov 0   ;;  %v2058_v33 = vlaneseq  ;;  %v2121_v34 = vmov 0  ;;  %v1394_v35 = vmov -inf  }
   0xf   : > { %457 = vmatprep.mubr.bf16.mxu0 %v1393_v0  ;;  %537 = vmatprep.mubr.bf16.mxu1 %v1393_v0  ;;  %v1395_v36 = vmov 0.0  }
  0x10   : > { %s2269_s9 = smov (!%p172_p4, %s1383_s9), 1  ;;  %vm1492_vm0 = vcmp.lt.s32.totalorder %v2058_v33, 256 }
  0x11   : > { %s1151_s13 = sshll.u32 %s2269_s9, 7  ;;  %v2122_v34 = vsel %vm1492_vm0, 4294967295, %v2121_v34  ;;  %199 = vst.msk [vmem:[#allocation2] sm:$0x3] %vm1492_vm0, %v1394_v35  ;;  %200 = vst.msk [vmem:[#allocation3] sm:$0x3] %vm1492_vm0, %v1395_v36 }
  0x12   : > { %s1438_s16 = scalar_lea.vmem %s2056_s1, %s1151_s13  ;;  %s1450_s19 = scalar_lea.vmem %s2055_s0, %s1151_s13  ;;  %2123 = vst [vmem:[#allocation4_spill] sm:$0xff] %v2122_v34 }
  0x13   : > { %v1197_v1 = vld [vmem:[%s1438_s16 + $0x4] ss:$8 sps:$4 sm:$0xff]   ;;  %v1199_v2 = vld [vmem:[%s1438_s16] ss:$8 sps:$4 sm:$0xff]   ;;  %v1200_v3 = vld [vmem:[%s1438_s16 + $0x14] ss:$8 sps:$4 sm:$0xff]  }
  0x14   : > { %425 = vmatprep.subr.bf16.mxu0 %v1197_v1  ;;  %1153 = vmatprep.subr.bf16.mxu1 %v1197_v1  ;;  %v1202_v4 = vld [vmem:[%s1438_s16 + $0x10] ss:$8 sps:$4 sm:$0xff]   ;;  %v1203_v5 = vld [vmem:[%s1438_s16 + $0x24] ss:$8 sps:$4 sm:$0xff]   ;;  %v1205_v6 = vld [vmem:[%s1438_s16 + $0x20] ss:$8 sps:$4 sm:$0xff]  }
  0x15   : > { %426 = vmatpush1.bf16.msra.mxu0 %v1199_v2  ;;  %1161 = vmatpush1.bf16.msra.mxu1 %v1199_v2  ;;  %v1206_v7 = vld [vmem:[%s1438_s16 + $0x34] ss:$8 sps:$4 sm:$0xff]   ;;  %v1208_v8 = vld [vmem:[%s1438_s16 + $0x30] ss:$8 sps:$4 sm:$0xff]   ;;  %v1209_v9 = vld [vmem:[%s1438_s16 + $0x44] ss:$8 sps:$4 sm:$0xff]  }
  0x16   : > { %427 = vmatprep.subr.bf16.mxu0 %v1200_v3  ;;  %1154 = vmatprep.subr.bf16.mxu1 %v1200_v3  ;;  %v1211_v10 = vld [vmem:[%s1438_s16 + $0x40] ss:$8 sps:$4 sm:$0xff]   ;;  %v1212_v11 = vld [vmem:[%s1438_s16 + $0x54] ss:$8 sps:$4 sm:$0xff]   ;;  %v1214_v12 = vld [vmem:[%s1438_s16 + $0x50] ss:$8 sps:$4 sm:$0xff]  }
  0x17   : > { %v1215_v13 = vld [vmem:[%s1438_s16 + $0x64] ss:$8 sps:$4 sm:$0xff]   ;;  %v1217_v14 = vld [vmem:[%s1438_s16 + $0x60] ss:$8 sps:$4 sm:$0xff]   ;;  %v1218_v15 = vld [vmem:[%s1438_s16 + $0x74] ss:$8 sps:$4 sm:$0xff]  }
  0x18   : > { %v1220_v16 = vld [vmem:[%s1438_s16 + $0x70] ss:$8 sps:$4 sm:$0xff]   ;;  %v1221_v17 = vld [vmem:[%s1450_s19] sm:$0xff]   ;;  %v1222_v19 = vld [vmem:[%s1450_s19 + $0x8] sm:$0xff]   ;;  %s1116_s20 = sshll.u32 %s2269_s9, 1 }
  0x19   : > { %428 = vmatpush1.bf16.msra.mxu0 %v1202_v4  ;;  %1162 = vmatpush1.bf16.msra.mxu1 %v1202_v4  ;;  %v1223_v18 = vld [vmem:[%s1450_s19 + $0x40] sm:$0xff]   ;;  %v1225_v20 = vld [vmem:[%s1450_s19 + $0x48] sm:$0xff]   ;;  %v1224_v21 = vld [vmem:[%s1450_s19 + $0x10] sm:$0xff]   ;;  %s189_s23 = scalar_lea.vmem %s2057_s2, %s1116_s20 }
  0x1a   : > { %429 = vmatprep.subr.bf16.mxu0 %v1203_v5  ;;  %1155 = vmatprep.subr.bf16.mxu1 %v1203_v5  ;;  %v1227_v22 = vld [vmem:[%s1450_s19 + $0x50] sm:$0xff]   ;;  %v1226_v23 = vld [vmem:[%s1450_s19 + $0x18] sm:$0xff]   ;;  %v1228_v25 = vld [vmem:[%s1450_s19 + $0x20] sm:$0xff]  }
  0x1b   : > { %v1229_v24 = vld [vmem:[%s1450_s19 + $0x58] sm:$0xff]   ;;  %v1231_v26 = vld [vmem:[%s1450_s19 + $0x60] sm:$0xff]   ;;  %v1230_v27 = vld [vmem:[%s1450_s19 + $0x28] sm:$0xff]  }
  0x1c   : > { %v1233_v28 = vld [vmem:[%s1450_s19 + $0x68] sm:$0xff]   ;;  %v1232_v29 = vld [vmem:[%s1450_s19 + $0x30] sm:$0xff]   ;;  %v1234_v31 = vld [vmem:[%s1450_s19 + $0x38] sm:$0xff]  }
  0x1d   : > { %430 = vmatpush1.bf16.msra.mxu0 %v1205_v6  ;;  %1163 = vmatpush1.bf16.msra.mxu1 %v1205_v6  ;;  %v1235_v30 = vld [vmem:[%s1450_s19 + $0x70] sm:$0xff]   ;;  %v1236_v32 = vld [vmem:[%s1450_s19 + $0x78] sm:$0xff]  }
  0x1e   : > { %431 = vmatprep.subr.bf16.mxu0 %v1206_v7  ;;  %1156 = vmatprep.subr.bf16.mxu1 %v1206_v7 }
  0x21   : > { %432 = vmatpush1.bf16.msra.mxu0 %v1208_v8  ;;  %1164 = vmatpush1.bf16.msra.mxu1 %v1208_v8 }
  0x22   : > { %433 = vmatprep.subr.bf16.mxu0 %v1209_v9  ;;  %1157 = vmatprep.subr.bf16.mxu1 %v1209_v9 }
  0x25   : > { %434 = vmatpush1.bf16.msra.mxu0 %v1211_v10  ;;  %1165 = vmatpush1.bf16.msra.mxu1 %v1211_v10 }
  0x26   : > { %435 = vmatprep.subr.bf16.mxu0 %v1212_v11  ;;  %1158 = vmatprep.subr.bf16.mxu1 %v1212_v11 }
  0x29   : > { %436 = vmatpush1.bf16.msra.mxu0 %v1214_v12  ;;  %1166 = vmatpush1.bf16.msra.mxu1 %v1214_v12 }
  0x2a   : > { %437 = vmatprep.subr.bf16.mxu0 %v1215_v13  ;;  %1159 = vmatprep.subr.bf16.mxu1 %v1215_v13 }
  0x2d   : > { %438 = vmatpush1.bf16.msra.mxu0 %v1217_v14  ;;  %1167 = vmatpush1.bf16.msra.mxu1 %v1217_v14 }
  0x2e   : > { %439 = vmatprep.subr.bf16.mxu0 %v1218_v15  ;;  %1160 = vmatprep.subr.bf16.mxu1 %v1218_v15 }
  0x31   : > { %440 = vmatpush1.bf16.msra.mxu0 %v1220_v16  ;;  %1168 = vmatpush1.bf16.msra.mxu1 %v1220_v16 }
  0x34   : > { %458 = vmatmul.mubr.bf16.vlgmr.msra.gmra.mrb[0].mxu0 %v1221_v17  ;;  %538 = vmatmul.mubr.bf16.vlgmr.msra.gmra.mrb[0].mxu1 %v1223_v18 }
  0x35   : > { %467 = vmatprep.mubr.bf16.mxu0 %v1393_v0  ;;  %547 = vmatprep.mubr.bf16.mxu1 %v1393_v0 }
  0x3c   : > { %468 = vmatmul.mubr.bf16.gmra.mrb[4].mxu0 %v1222_v19  ;;  %548 = vmatmul.mubr.bf16.gmra.mrb[4].mxu1 %v1225_v20 }
  0x3d   : > { %477 = vmatprep.mubr.bf16.mxu0 %v1393_v0  ;;  %557 = vmatprep.mubr.bf16.mxu1 %v1393_v0 }
  0x44   : > { %478 = vmatmul.mubr.bf16.gmra.mrb[8].mxu0 %v1224_v21  ;;  %558 = vmatmul.mubr.bf16.gmra.mrb[8].mxu1 %v1227_v22 }
  0x45   : > { %487 = vmatprep.mubr.bf16.mxu0 %v1393_v0  ;;  %567 = vmatprep.mubr.bf16.mxu1 %v1393_v0 }
  0x4c   : > { %488 = vmatmul.mubr.bf16.gmra.mrb[12].mxu0 %v1226_v23  ;;  %568 = vmatmul.mubr.bf16.gmra.mrb[12].mxu1 %v1229_v24 }
  0x4d   : > { %497 = vmatprep.mubr.bf16.mxu0 %v1393_v0  ;;  %577 = vmatprep.mubr.bf16.mxu1 %v1393_v0 }
  0x54   : > { %498 = vmatmul.mubr.bf16.gmra.mrb[16].mxu0 %v1228_v25  ;;  %578 = vmatmul.mubr.bf16.gmra.mrb[16].mxu1 %v1231_v26 }
  0x55   : > { %507 = vmatprep.mubr.bf16.mxu0 %v1393_v0  ;;  %587 = vmatprep.mubr.bf16.mxu1 %v1393_v0 }
  0x5c   : > { %508 = vmatmul.mubr.bf16.gmra.mrb[20].mxu0 %v1230_v27  ;;  %588 = vmatmul.mubr.bf16.gmra.mrb[20].mxu1 %v1233_v28 }
  0x5d   : > { %517 = vmatprep.mubr.bf16.mxu0 %v1393_v0  ;;  %597 = vmatprep.mubr.bf16.mxu1 %v1393_v0 }
  0x64   : > { %518 = vmatmul.mubr.bf16.gmra.mrb[24].mxu0 %v1232_v29  ;;  %598 = vmatmul.mubr.bf16.gmra.mrb[24].mxu1 %v1235_v30 }
  0x65   : > { %527 = vmatprep.mubr.bf16.mxu0 %v1393_v0  ;;  %607 = vmatprep.mubr.bf16.mxu1 %v1393_v0 }
  0x6c   : > { %528 = vmatmul.mubr.bf16.gmra.mrb[28].mxu0 %v1234_v31  ;;  %608 = vmatmul.mubr.bf16.gmra.mrb[28].mxu1 %v1236_v32 }
 0x107   : > { %v1500_v37 = vpop.f32.mrb[0].mxu0  ;;  %v1502_v38 = vpop.f32.mrb[0].mxu1 }
 0x108   : > { %2124 = vst [vmem:[#allocation5_spill] sm:$0xff] %v1502_v38  ;;  %v1504_v39 = vpop.f32.mrb[1].mxu0  ;;  %v1506_v40 = vpop.f32.mrb[1].mxu1 }
 0x109   : > { %v1508_v41 = vpop.f32.mrb[2].mxu0  ;;  %v1510_v42 = vpop.f32.mrb[2].mxu1 }
 0x10a   : > { %v1512_v43 = vpop.f32.mrb[3].mxu0  ;;  %v1514_v44 = vpop.f32.mrb[3].mxu1 }
 0x10f   : > { %v1516_v45 = vpop.f32.mrb[4].mxu0  ;;  %v1518_v46 = vpop.f32.mrb[4].mxu1 }
 0x110   : > { %v619_v47 = vmax.f32 %v1500_v37, %v1516_v45  ;;  %v1522_v48 = vpop.f32.mrb[5].mxu0  ;;  %v1524_v49 = vpop.f32.mrb[5].mxu1 }
 0x111   : > { %v656_v50 = vmax.f32 %v1504_v39, %v1522_v48  ;;  %v1528_v51 = vpop.f32.mrb[6].mxu0  ;;  %v1530_v52 = vpop.f32.mrb[6].mxu1 }
 0x112   : > { %v620_v53 = vmax.f32 %v1508_v41, %v1528_v51  ;;  %v1534_v54 = vpop.f32.mrb[7].mxu0  ;;  %v1536_v55 = vpop.f32.mrb[7].mxu1 }
 0x113   : > { %v657_v56 = vmax.f32 %v1512_v43, %v1534_v54 }
 0x117   : > { %v1540_v57 = vpop.f32.mrb[8].mxu0  ;;  %v1542_v58 = vpop.f32.mrb[8].mxu1 }
 0x118   : > { %v621_v59 = vmax.f32 %v619_v47, %v1540_v57  ;;  %v1545_v60 = vpop.f32.mrb[9].mxu0  ;;  %v1547_v61 = vpop.f32.mrb[9].mxu1 }
 0x119   : > { %v658_v62 = vmax.f32 %v656_v50, %v1545_v60  ;;  %v1550_v63 = vpop.f32.mrb[10].mxu0  ;;  %v1552_v0 = vpop.f32.mrb[10].mxu1 }
 0x11a   : > { %v622_v1 = vmax.f32 %v620_v53, %v1550_v63  ;;  %v1555_v2 = vpop.f32.mrb[11].mxu0  ;;  %v1557_v3 = vpop.f32.mrb[11].mxu1 }
 0x11b   : > { %v659_v4 = vmax.f32 %v657_v56, %v1555_v2 }
 0x11f   : > { %v1560_v5 = vpop.f32.mrb[12].mxu0  ;;  %v1562_v6 = vpop.f32.mrb[12].mxu1 }
 0x120   : > { %v623_v7 = vmax.f32 %v621_v59, %v1560_v5  ;;  %v1565_v8 = vpop.f32.mrb[13].mxu0  ;;  %v1567_v9 = vpop.f32.mrb[13].mxu1 }
 0x121   : > { %v660_v10 = vmax.f32 %v658_v62, %v1565_v8  ;;  %v1570_v11 = vpop.f32.mrb[14].mxu0  ;;  %v1572_v12 = vpop.f32.mrb[14].mxu1 }
 0x122   : > { %v624_v13 = vmax.f32 %v622_v1, %v1570_v11  ;;  %v1575_v14 = vpop.f32.mrb[15].mxu0  ;;  %v1577_v15 = vpop.f32.mrb[15].mxu1 }
 0x123   : > { %2125 = vst [vmem:[#allocation6_spill] sm:$0xff] %v1577_v15  ;;  %v661_v16 = vmax.f32 %v659_v4, %v1575_v14 }
 0x127   : > { %v1580_v17 = vpop.f32.mrb[16].mxu0  ;;  %v1582_v18 = vpop.f32.mrb[16].mxu1 }
 0x128   : > { %2126 = vst [vmem:[#allocation7_spill] sm:$0xff] %v1582_v18  ;;  %v625_v19 = vmax.f32 %v623_v7, %v1580_v17  ;;  %v1585_v20 = vpop.f32.mrb[17].mxu0  ;;  %v1587_v21 = vpop.f32.mrb[17].mxu1 }
 0x129   : > { %2127 = vst [vmem:[#allocation8_spill] sm:$0xff] %v1585_v20  ;;  %2128 = vst [vmem:[#allocation9_spill] sm:$0xff] %v1587_v21  ;;  %v662_v22 = vmax.f32 %v660_v10, %v1585_v20  ;;  %v1590_v23 = vpop.f32.mrb[18].mxu0  ;;  %v1592_v24 = vpop.f32.mrb[18].mxu1 }
 0x12a   : > { %2129 = vst [vmem:[#allocation10_spill] sm:$0xff] %v1590_v23  ;;  %2130 = vst [vmem:[#allocation11_spill] sm:$0xff] %v1592_v24  ;;  %v626_v25 = vmax.f32 %v624_v13, %v1590_v23  ;;  %v1595_v26 = vpop.f32.mrb[19].mxu0  ;;  %v1597_v27 = vpop.f32.mrb[19].mxu1 }
 0x12b   : > { %2131 = vst [vmem:[#allocation12_spill] sm:$0xff] %v1595_v26  ;;  %2132 = vst [vmem:[#allocation13_spill] sm:$0xff] %v1597_v27  ;;  %v663_v28 = vmax.f32 %v661_v16, %v1595_v26 }
 0x12f   : > { %v1600_v29 = vpop.f32.mrb[20].mxu0  ;;  %v1602_v30 = vpop.f32.mrb[20].mxu1 }
 0x130   : > { %2133 = vst [vmem:[#allocation14_spill] sm:$0xff] %v1600_v29  ;;  %2134 = vst [vmem:[#allocation15_spill] sm:$0xff] %v1602_v30  ;;  %v627_v31 = vmax.f32 %v625_v19, %v1600_v29  ;;  %v1605_v32 = vpop.f32.mrb[21].mxu0  ;;  %v1607_v35 = vpop.f32.mrb[21].mxu1 }
 0x131   : > { %2135 = vst [vmem:[#allocation16_spill] sm:$0xff] %v1605_v32  ;;  %2136 = vst [vmem:[#allocation17_spill] sm:$0xff] %v1607_v35  ;;  %v664_v36 = vmax.f32 %v662_v22, %v1605_v32  ;;  %v1610_v47 = vpop.f32.mrb[22].mxu0  ;;  %v1612_v50 = vpop.f32.mrb[22].mxu1 }
 0x132   : > { %2137 = vst [vmem:[#allocation18_spill] sm:$0xff] %v1610_v47  ;;  %2138 = vst [vmem:[#allocation19_spill] sm:$0xff] %v1612_v50  ;;  %v628_v53 = vmax.f32 %v626_v25, %v1610_v47  ;;  %v1615_v56 = vpop.f32.mrb[23].mxu0  ;;  %v1617_v59 = vpop.f32.mrb[23].mxu1 }
 0x133   : > { %2139 = vst [vmem:[#allocation20_spill] sm:$0xff] %v1615_v56  ;;  %2140 = vst [vmem:[#allocation21_spill] sm:$0xff] %v1617_v59  ;;  %v665_v62 = vmax.f32 %v663_v28, %v1615_v56 }
 0x137   : > { %v1620_v1 = vpop.f32.mrb[24].mxu0  ;;  %v1622_v4 = vpop.f32.mrb[24].mxu1 }
 0x138   : > { %2141 = vst [vmem:[#allocation22_spill] sm:$0xff] %v1620_v1  ;;  %2142 = vst [vmem:[#allocation23_spill] sm:$0xff] %v1622_v4  ;;  %v629_v7 = vmax.f32 %v627_v31, %v1620_v1  ;;  %v1625_v10 = vpop.f32.mrb[25].mxu0  ;;  %v1627_v13 = vpop.f32.mrb[25].mxu1 }
 0x139   : > { %2143 = vst [vmem:[#allocation24_spill] sm:$0xff] %v1625_v10  ;;  %2144 = vst [vmem:[#allocation25_spill] sm:$0xff] %v1627_v13  ;;  %v666_v16 = vmax.f32 %v664_v36, %v1625_v10  ;;  %v1630_v19 = vpop.f32.mrb[26].mxu0  ;;  %v1632_v22 = vpop.f32.mrb[26].mxu1 }
 0x13a   : > { %2145 = vst [vmem:[#allocation26_spill] sm:$0xff] %v1630_v19  ;;  %2146 = vst [vmem:[#allocation27_spill] sm:$0xff] %v1632_v22  ;;  %v630_v25 = vmax.f32 %v628_v53, %v1630_v19  ;;  %v1635_v33 = vpop.f32.mrb[27].mxu0  ;;  %v1637_v28 = vpop.f32.mrb[27].mxu1 }
 0x13b   : > { %2147 = vst [vmem:[#allocation28_spill] sm:$0xff] %v1635_v33  ;;  %2148 = vst [vmem:[#allocation29_spill] sm:$0xff] %v1637_v28  ;;  %v667_v56 = vmax.f32 %v665_v62, %v1635_v33 }
 0x13f   : > { %v1640_v47 = vpop.f32.mrb[28].mxu0  ;;  %v1642_v31 = vpop.f32.mrb[28].mxu1 }
 0x140   : > { %2149 = vst [vmem:[#allocation30_spill] sm:$0xff] %v1640_v47  ;;  %2150 = vst [vmem:[#allocation31_spill] sm:$0xff] %v1642_v31  ;;  %v631_v1 = vmax.f32 %v629_v7, %v1640_v47  ;;  %v1645_v32 = vpop.f32.mrb[29].mxu0  ;;  %v1647_v36 = vpop.f32.mrb[29].mxu1 }
 0x141   : > { %2151 = vst [vmem:[#allocation32_spill] sm:$0xff] %v1645_v32  ;;  %2152 = vst [vmem:[#allocation33_spill] sm:$0xff] %v1647_v36  ;;  %v668_v10 = vmax.f32 %v666_v16, %v1645_v32  ;;  %v1650_v29 = vpop.f32.mrb[30].mxu0  ;;  %v1652_v53 = vpop.f32.mrb[30].mxu1 }
 0x142   : > { %2153 = vst [vmem:[#allocation34_spill] sm:$0xff] %v1650_v29  ;;  %2154 = vst [vmem:[#allocation35_spill] sm:$0xff] %v1652_v53  ;;  %v633_v19 = vmax.f32 %v631_v1, %v1502_v38  ;;  %v632_v62 = vmax.f32 %v630_v25, %v1650_v29  ;;  %v1656_v33 = vpop.f32.mrb[31].mxu0  ;;  %v1658_v26 = vpop.f32.mrb[31].mxu1 }
 0x143   : > { %v670_v7 = vmax.f32 %v668_v10, %v1506_v40  ;;  %v669_v47 = vmax.f32 %v667_v56, %v1656_v33 }
 0x144   : > { %v635_v23 = vmax.f32 %v633_v19, %v1518_v46  ;;  %v634_v16 = vmax.f32 %v632_v62, %v1510_v42 }
 0x145   : > { %v672_v32 = vmax.f32 %v670_v7, %v1524_v49  ;;  %v671_v20 = vmax.f32 %v669_v47, %v1514_v44 }
 0x146   : > { %v637_v1 = vmax.f32 %v635_v23, %v1542_v58  ;;  %v636_v25 = vmax.f32 %v634_v16, %v1530_v52 }
 0x147   : > { %v674_v38 = vmax.f32 %v672_v32, %v1547_v61  ;;  %v673_v29 = vmax.f32 %v671_v20, %v1536_v55 }
 0x148   : > { %v638_v10 = vmax.f32 %v636_v25, %v1552_v0  ;;  %v639_v56 = vmax.f32 %v637_v1, %v1562_v6 }
 0x149   : > { %v675_v19 = vmax.f32 %v673_v29, %v1557_v3  ;;  %v676_v62 = vmax.f32 %v674_v38, %v1567_v9 }
 0x14a   : > { %v641_v7 = vmax.f32 %v639_v56, %v1582_v18  ;;  %v640_v47 = vmax.f32 %v638_v10, %v1572_v12  ;;  %v2183_v18 = vld [vmem:[#allocation35_spill] sm:$0xff] }
 0x14b   : > { %v678_v23 = vmax.f32 %v676_v62, %v1587_v21  ;;  %v677_v16 = vmax.f32 %v675_v19, %v1577_v15 }
 0x14c   : > { %v643_v32 = vmax.f32 %v641_v7, %v1602_v30  ;;  %v642_v20 = vmax.f32 %v640_v47, %v1592_v24 }
 0x14d   : > { %v680_v25 = vmax.f32 %v678_v23, %v1607_v35  ;;  %v679_v1 = vmax.f32 %v677_v16, %v1597_v27 }
 0x14e   : > { %v645_v29 = vmax.f32 %v643_v32, %v1622_v4  ;;  %v644_v38 = vmax.f32 %v642_v20, %v1612_v50 }
 0x14f   : > { %v682_v56 = vmax.f32 %v680_v25, %v1627_v13  ;;  %v681_v10 = vmax.f32 %v679_v1, %v1617_v59  ;;  %v1396_v13 = vmov 1966171168  }
 0x150   : > { %v646_v62 = vmax.f32 %v644_v38, %v1632_v22  ;;  %v647_v19 = vmax.f32 %v645_v29, %v1642_v31  ;;  %v697_v1 = vunpack.c.l.s4 %v1396_v13 }
 0x151   : > { %v683_v7 = vmax.f32 %v681_v10, %v1637_v28  ;;  %v684_v47 = vmax.f32 %v682_v56, %v1647_v36  ;;  %v2155_v10 = vlaneseq }
 0x152   : > { %v648_v23 = vmax.f32 %v646_v62, %v1652_v53  ;;  %v698_v31 = vunpack.c.0.s8 %v697_v1  ;;  %v2170_v1 = vld [vmem:[#allocation30_spill] sm:$0xff] }
 0x153   : > { %v685_v16 = vmax.f32 %v683_v7, %v1658_v26  ;;  %v700_v28 = vshrl.u32 %v2155_v10, 7  ;;  %v2167_v10 = vld [vmem:[#allocation24_spill] sm:$0xff] }
 0x154   : > { %v649_v35 = vmax.f32 %v647_v19, %v648_v23 }
 0x155   : > { %v686_v32 = vmax.f32 %v684_v47, %v685_v16  ;;  %v1693_v7 = vsub.s32 %v698_v31, %v700_v28  ;;  %v720_v13 = vsub.s32 0, %v700_v28  ;;  %v724_v23 = vsub.s32 1, %v700_v28  ;;  %v2173_v16 = vld [vmem:[#allocation5_spill] sm:$0xff] }
 0x156   : > { %v650_v4 = vrot.slane %v649_v35, 4 }
 0x157   : > { %v687_v20 = vrot.slane %v686_v32, 4  ;;  %2156 = vst [vmem:[#allocation36_spill] sm:$0xff] %v1693_v7 }
 0x158   : > { %v651_v50 = vmax.f32 %v649_v35, %v650_v4  ;;  %v1696_v35 = vld [vmem:[#allocation2] sm:$0x3] }
 0x159   : > { %v688_v25 = vmax.f32 %v686_v32, %v687_v20  ;;  %2157 = vst [vmem:[#allocation37_spill] sm:$0xff] %v1696_v35  ;;  %v2172_v20 = vld [vmem:[#allocation34_spill] sm:$0xff]  ;;  %v2180_v32 = vld [vmem:[#allocation29_spill] sm:$0xff] }
 0x15a   : > { %v652_v59 = vrot.slane %v651_v50, 2 }
 0x15b   : > { %v689_v38 = vrot.slane %v688_v25, 2 }
 0x15c   : > { %v653_v22 = vmax.f32 %v651_v50, %v652_v59  ;;  %v2166_v59 = vld [vmem:[#allocation22_spill] sm:$0xff] }
 0x15d   : > { %v690_v29 = vmax.f32 %v688_v25, %v689_v38  ;;  %v2169_v38 = vld [vmem:[#allocation28_spill] sm:$0xff] }
 0x15e   : > { %v654_v56 = vrot.slane %v653_v22, 1  ;;  %v2171_v25 = vld [vmem:[#allocation32_spill] sm:$0xff] }
 0x15f   : > { %v691_v36 = vrot.slane %v690_v29, 1 }
 0x160   : > { %v655_v62 = vmax.f32 %v653_v22, %v654_v56  ;;  %v2160_v56 = vld [vmem:[#allocation10_spill] sm:$0xff] }
 0x161   : > { %v692_v53 = vmax.f32 %v690_v29, %v691_v36  ;;  %v2168_v29 = vld [vmem:[#allocation26_spill] sm:$0xff]  ;;  %v2177_v36 = vld [vmem:[#allocation23_spill] sm:$0xff] }
 0x163   : > { %v695_v19 = vcombine.low %v655_v62, %v692_v53  ;;  %v2161_v62 = vld [vmem:[#allocation12_spill] sm:$0xff] }
 0x165   : > { %v702_v47 = vrot.slane %v695_v19, %v1693_v7  ;;  %v2162_v19 = vld [vmem:[#allocation14_spill] sm:$0xff] }
 0x167   : > { %v709_v4 = vrot.slane %v702_v47, %v1693_v7  ;;  %v2163_v47 = vld [vmem:[#allocation16_spill] sm:$0xff]  ;;  %v2179_v7 = vld [vmem:[#allocation27_spill] sm:$0xff] }
 0x169   : > { %v1700_v50 = vmax.f32 %v1696_v35, %v709_v4  ;;  %v2164_v4 = vld [vmem:[#allocation18_spill] sm:$0xff] }
 0x16b   : > { %2158 = vst [vmem:[#allocation38_spill] sm:$0xff] %v1700_v50  ;;  %v1705_v22 = vrot.slane %v1700_v50, %v720_v13  ;;  %v1708_v31 = vrot.slane %v1700_v50, %v724_v23  ;;  %1018 = vst.msk [vmem:[#allocation2] sm:$0x3] %vm1492_vm0, %v1700_v50  ;;  %v2159_v23 = vld [vmem:[#allocation8_spill] sm:$0xff] }
 0x16c   : > { %v2165_v13 = vld [vmem:[#allocation20_spill] sm:$0xff] }
 0x16d   : > { %v790_v28 = vsub.f32 %v2183_v18, %v1705_v22  ;;  %v2184_v24 = vsub.f32 %v1500_v37, %v1705_v22  ;;  %v2185_v27 = vsub.f32 %v1504_v39, %v1708_v31  ;;  %v2186_v50 = vsub.f32 %v1508_v41, %v1705_v22 }
 0x16e   : > { %v2187_v53 = vsub.f32 %v1512_v43, %v1708_v31  ;;  %v2188_v21 = vsub.f32 %v1516_v45, %v1705_v22  ;;  %v2189_v39 = vsub.f32 %v1522_v48, %v1708_v31  ;;  %v2190_v41 = vsub.f32 %v1528_v51, %v1705_v22 }
 0x16f   : > { %v792_v34 = vmul.f32 1.442695, %v2184_v24  ;;  %v794_v30 = vmul.f32 1.442695, %v2185_v27  ;;  %v796_v35 = vmul.f32 1.442695, %v2186_v50  ;;  %v2191_v43 = vsub.f32 %v1534_v54, %v1708_v31 }
 0x170   : > { %v798_v15 = vmul.f32 1.442695, %v2187_v53  ;;  %v800_v37 = vmul.f32 1.442695, %v2188_v21  ;;  %v802_v24 = vmul.f32 1.442695, %v2189_v39  ;;  %v2193_v45 = vsub.f32 %v1545_v60, %v1708_v31 }
 0x171   : > { %1237 = vpow2.f32 %v792_v34  ;;  %v804_v27 = vmul.f32 1.442695, %v2190_v41  ;;  %v806_v50 = vmul.f32 1.442695, %v2191_v43  ;;  %v2192_v34 = vsub.f32 %v1540_v57, %v1705_v22 }
 0x172   : > { %1239 = vpow2.f32 %v794_v30  ;;  %v2194_v48 = vsub.f32 %v1550_v63, %v1705_v22  ;;  %v2195_v54 = vsub.f32 %v1555_v2, %v1708_v31  ;;  %v2196_v57 = vsub.f32 %v1560_v5, %v1705_v22 }
 0x173   : > { %1241 = vpow2.f32 %v796_v35  ;;  %v808_v30 = vmul.f32 1.442695, %v2192_v34  ;;  %v2197_v60 = vsub.f32 %v1565_v8, %v1708_v31  ;;  %v2198_v63 = vsub.f32 %v1570_v11, %v1705_v22 }
 0x174   : > { %1243 = vpow2.f32 %v798_v15  ;;  %v810_v15 = vmul.f32 1.442695, %v2193_v45  ;;  %v812_v51 = vmul.f32 1.442695, %v2194_v48  ;;  %v814_v21 = vmul.f32 1.442695, %v2195_v54 }
 0x175   : > { %1245 = vpow2.f32 %v800_v37  ;;  %v816_v53 = vmul.f32 1.442695, %v2196_v57  ;;  %v818_v39 = vmul.f32 1.442695, %v2197_v60  ;;  %v820_v41 = vmul.f32 1.442695, %v2198_v63 }
 0x176   : > { %1247 = vpow2.f32 %v802_v24  ;;  %v2200_v5 = vsub.f32 %v1580_v17, %v1705_v22  ;;  %v2201_v8 = vsub.f32 %v2159_v23, %v1708_v31  ;;  %v2202_v11 = vsub.f32 %v2160_v56, %v1705_v22 }
 0x177   : > { %1249 = vpow2.f32 %v804_v27  ;;  %v2199_v27 = vsub.f32 %v1575_v14, %v1708_v31  ;;  %v2204_v23 = vsub.f32 %v2162_v19, %v1705_v22  ;;  %v2205_v56 = vsub.f32 %v2163_v47, %v1708_v31 }
 0x178   : > { %1251 = vpow2.f32 %v806_v50  ;;  %v824_v50 = vmul.f32 1.442695, %v2200_v5  ;;  %v826_v34 = vmul.f32 1.442695, %v2201_v8  ;;  %v828_v45 = vmul.f32 1.442695, %v2202_v11 }
 0x179   : > { %1253 = vpow2.f32 %v808_v30  ;;  %v822_v43 = vmul.f32 1.442695, %v2199_v27  ;;  %v2207_v19 = vsub.f32 %v2165_v13, %v1708_v31  ;;  %v2208_v47 = vsub.f32 %v2166_v59, %v1705_v22 }
 0x17a   : > { %1255 = vpow2.f32 %v810_v15  ;;  %v2210_v13 = vsub.f32 %v2168_v29, %v1705_v22  ;;  %v2211_v59 = vsub.f32 %v2169_v38, %v1708_v31  ;;  %v2213_v29 = vsub.f32 %v2171_v25, %v1708_v31 }
 0x17b   : > { %v1238_v35 = vpop.eup %1237  ;;  %1257 = vpow2.f32 %v812_v51  ;;  %v2203_v51 = vsub.f32 %v2161_v62, %v1708_v31  ;;  %v2206_v62 = vsub.f32 %v2164_v4, %v1705_v22  ;;  %v2209_v4 = vsub.f32 %v2167_v10, %v1708_v31 }
 0x17c   : > { %v1240_v37 = vpop.eup %1239  ;;  %1259 = vpow2.f32 %v814_v21  ;;  %v832_v21 = vmul.f32 1.442695, %v2204_v23  ;;  %v844_v11 = vmul.f32 1.442695, %v2210_v13  ;;  %v2212_v10 = vsub.f32 %v2170_v1, %v1705_v22 }
 0x17d   : > { %v1242_v24 = vpop.eup %1241  ;;  %1261 = vpow2.f32 %v816_v53  ;;  %v830_v17 = vmul.f32 1.442695, %v2203_v51  ;;  %v2214_v38 = vsub.f32 %v2172_v20, %v1705_v22  ;;  %v2215_v1 = vsub.f32 %v1656_v33, %v1708_v31 }
 0x17e   : > { %v1244_v2 = vpop.eup %1243  ;;  %1263 = vpow2.f32 %v818_v39  ;;  %v920_v15 = vadd.f32 %v1242_v24, %v1238_v35  ;;  %v834_v35 = vmul.f32 1.442695, %v2205_v56  ;;  %v836_v39 = vmul.f32 1.442695, %v2206_v62 }
 0x17f   : > { %v1246_v30 = vpop.eup %1245  ;;  %1265 = vpow2.f32 %v820_v41  ;;  %v957_v48 = vadd.f32 %v1244_v2, %v1240_v37  ;;  %v838_v2 = vmul.f32 1.442695, %v2207_v19  ;;  %v854_v62 = vmul.f32 1.442695, %v2215_v1 }
 0x180   : > { %v1248_v14 = vpop.eup %1247  ;;  %1267 = vpow2.f32 %v822_v43  ;;  %v921_v57 = vadd.f32 %v1246_v30, %v920_v15  ;;  %v840_v43 = vmul.f32 1.442695, %v2208_v47  ;;  %v2216_v25 = vsub.f32 %v2173_v16, %v1705_v22 }
 0x181   : > { %v1250_v54 = vpop.eup %1249  ;;  %1269 = vpow2.f32 %v824_v50  ;;  %v958_v53 = vadd.f32 %v1248_v14, %v957_v48  ;;  %v846_v14 = vmul.f32 1.442695, %v2211_v59  ;;  %v2217_v20 = vsub.f32 %v1506_v40, %v1708_v31 }
 0x182   : > { %v1252_v60 = vpop.eup %1251  ;;  %1271 = vpow2.f32 %v826_v34  ;;  %v922_v24 = vadd.f32 %v1250_v54, %v921_v57  ;;  %v842_v34 = vmul.f32 1.442695, %v2209_v4  ;;  %v850_v57 = vmul.f32 1.442695, %v2213_v29 }
 0x183   : > { %v1254_v37 = vpop.eup %1253  ;;  %1273 = vpow2.f32 %v828_v45  ;;  %v959_v63 = vadd.f32 %v1252_v60, %v958_v53  ;;  %v852_v60 = vmul.f32 1.442695, %v2214_v38  ;;  %v2218_v33 = vsub.f32 %v1510_v42, %v1705_v22 }
 0x184   : > { %v1256_v41 = vpop.eup %1255  ;;  %1275 = vpow2.f32 %v830_v17  ;;  %v923_v5 = vadd.f32 %v1254_v37, %v922_v24  ;;  %v848_v17 = vmul.f32 1.442695, %v2212_v10  ;;  %v856_v24 = vmul.f32 1.442695, %v2216_v25 }
 0x185   : > { %v1258_v27 = vpop.eup %1257  ;;  %1277 = vpow2.f32 %v832_v21  ;;  %v960_v50 = vadd.f32 %v1256_v41, %v959_v63  ;;  %v860_v47 = vmul.f32 1.442695, %v2218_v33  ;;  %v2219_v16 = vsub.f32 %v1514_v44, %v1708_v31 }
 0x186   : > { %v1260_v8 = vpop.eup %1259  ;;  %1279 = vpow2.f32 %v834_v35  ;;  %v924_v45 = vadd.f32 %v1258_v27, %v923_v5  ;;  %v2220_v40 = vsub.f32 %v1518_v46, %v1705_v22  ;;  %v2221_v42 = vsub.f32 %v1524_v49, %v1708_v31 }
 0x187   : > { %v1262_v30 = vpop.eup %1261  ;;  %1281 = vpow2.f32 %v836_v39  ;;  %v961_v15 = vadd.f32 %v1260_v8, %v960_v50  ;;  %v862_v8 = vmul.f32 1.442695, %v2219_v16  ;;  %v2222_v44 = vsub.f32 %v1530_v52, %v1705_v22 }
 0x188   : > { %v1264_v48 = vpop.eup %1263  ;;  %1283 = vpow2.f32 %v838_v2  ;;  %v925_v54 = vadd.f32 %v1262_v30, %v924_v45  ;;  %v858_v2 = vmul.f32 1.442695, %v2217_v20  ;;  %v866_v45 = vmul.f32 1.442695, %v2221_v42 }
 0x189   : > { %v1266_v51 = vpop.eup %1265  ;;  %1285 = vpow2.f32 %v840_v43  ;;  %v962_v23 = vadd.f32 %v1264_v48, %v961_v15  ;;  %v868_v48 = vmul.f32 1.442695, %v2222_v44  ;;  %v2223_v46 = vsub.f32 %v1536_v55, %v1708_v31 }
 0x18a   : > { %v1268_v21 = vpop.eup %1267  ;;  %1287 = vpow2.f32 %v842_v34  ;;  %v926_v56 = vadd.f32 %v1266_v51, %v925_v54  ;;  %v864_v34 = vmul.f32 1.442695, %v2220_v40  ;;  %v2224_v49 = vsub.f32 %v1542_v58, %v1705_v22 }
 0x18b   : > { %v1270_v53 = vpop.eup %1269  ;;  %1289 = vpow2.f32 %v844_v11  ;;  %v963_v35 = vadd.f32 %v1268_v21, %v962_v23  ;;  %v870_v10 = vmul.f32 1.442695, %v2223_v46  ;;  %v2225_v52 = vsub.f32 %v1547_v61, %v1708_v31  ;;  %v2241_v46 = vld [vmem:[#allocation15_spill] sm:$0xff] }
 0x18c   : > { %v1272_v37 = vpop.eup %1271  ;;  %1291 = vpow2.f32 %v846_v14  ;;  %v927_v63 = vadd.f32 %v1270_v53, %v926_v56  ;;  %v872_v54 = vmul.f32 1.442695, %v2224_v49  ;;  %v2226_v55 = vsub.f32 %v1552_v0, %v1705_v22 }
 0x18d   : > { %v1274_v39 = vpop.eup %1273  ;;  %1293 = vpow2.f32 %v848_v17  ;;  %v964_v41 = vadd.f32 %v1272_v37, %v963_v35  ;;  %v2227_v58 = vsub.f32 %v1557_v3, %v1708_v31  ;;  %v2228_v61 = vsub.f32 %v1562_v6, %v1705_v22  ;;  %v2231_v6 = vld [vmem:[#allocation6_spill] sm:$0xff] }
 0x18e   : > { %v1276_v19 = vpop.eup %1275  ;;  %1295 = vpow2.f32 %v850_v57  ;;  %v928_v43 = vadd.f32 %v1274_v39, %v927_v63  ;;  %v874_v57 = vmul.f32 1.442695, %v2225_v52  ;;  %v876_v38 = vmul.f32 1.442695, %v2226_v55 }
 0x18f   : > { %v1278_v27 = vpop.eup %1277  ;;  %1297 = vpow2.f32 %v852_v60  ;;  %v965_v5 = vadd.f32 %v1276_v19, %v964_v41  ;;  %v878_v37 = vmul.f32 1.442695, %v2227_v58  ;;  %v2229_v0 = vsub.f32 %v1567_v9, %v1708_v31  ;;  %v2247_v58 = vld [vmem:[#allocation21_spill] sm:$0xff] }
 0x190   : > { %v1280_v50 = vpop.eup %1279  ;;  %1299 = vpow2.f32 %v854_v62  ;;  %v929_v30 = vadd.f32 %v1278_v27, %v928_v43  ;;  %v880_v62 = vmul.f32 1.442695, %v2228_v61  ;;  %v2230_v3 = vsub.f32 %v1572_v12, %v1705_v22  ;;  %v2235_v12 = vld [vmem:[#allocation9_spill] sm:$0xff] }
 0x191   : > { %v1282_v4 = vpop.eup %1281  ;;  %1301 = vpow2.f32 %v856_v24  ;;  %v966_v13 = vadd.f32 %v1280_v50, %v965_v5  ;;  %v882_v63 = vmul.f32 1.442695, %v2229_v0  ;;  %v2232_v33 = vsub.f32 %v2231_v6, %v1708_v31  ;;  %v2233_v5 = vld [vmem:[#allocation7_spill] sm:$0xff] }
 0x192   : > { %v1284_v11 = vpop.eup %1283  ;;  %1303 = vpow2.f32 %v858_v2  ;;  %v930_v59 = vadd.f32 %v1282_v4, %v929_v30  ;;  %v884_v19 = vmul.f32 1.442695, %v2230_v3  ;;  %v2234_v9 = vsub.f32 %v2233_v5, %v1705_v22  ;;  %v2254_v5 = vld [vmem:[#allocation31_spill] sm:$0xff] }
 0x193   : > { %v1286_v15 = vpop.eup %1285  ;;  %1305 = vpow2.f32 %v860_v47  ;;  %v967_v14 = vadd.f32 %v1284_v11, %v966_v13  ;;  %v886_v47 = vmul.f32 1.442695, %v2232_v33  ;;  %v2236_v40 = vsub.f32 %v2235_v12, %v1708_v31  ;;  %v2237_v13 = vld [vmem:[#allocation11_spill] sm:$0xff] }
 0x194   : > { %v1288_v51 = vpop.eup %1287  ;;  %1307 = vpow2.f32 %v862_v8  ;;  %v931_v23 = vadd.f32 %v1286_v15, %v930_v59  ;;  %v888_v50 = vmul.f32 1.442695, %v2234_v9  ;;  %v2238_v11 = vsub.f32 %v2237_v13, %v1705_v22 }
 0x195   : > { %v1290_v17 = vpop.eup %1289  ;;  %1309 = vpow2.f32 %v864_v34  ;;  %v968_v21 = vadd.f32 %v1288_v51, %v967_v14  ;;  %v890_v34 = vmul.f32 1.442695, %v2236_v40  ;;  %v2255_v9 = vsub.f32 %v2254_v5, %v1705_v22  ;;  %v712_v5 = vld [vmem:[#allocation3] sm:$0x3] }
 0x196   : > { %v1292_v29 = vpop.eup %1291  ;;  %1311 = vpow2.f32 %v866_v45  ;;  %v932_v60 = vadd.f32 %v1290_v17, %v931_v23  ;;  %v892_v42 = vmul.f32 1.442695, %v2238_v11 }
 0x197   : > { %v1294_v53 = vpop.eup %1293  ;;  %1313 = vpow2.f32 %v868_v48  ;;  %v969_v56 = vadd.f32 %v1292_v29, %v968_v21  ;;  %v2239_v48 = vld [vmem:[#allocation13_spill] sm:$0xff] }
 0x198   : > { %v1296_v35 = vpop.eup %1295  ;;  %1315 = vpow2.f32 %v870_v10  ;;  %v933_v39 = vadd.f32 %v1294_v53, %v932_v60  ;;  %v2240_v59 = vsub.f32 %v2239_v48, %v1708_v31  ;;  %v2242_v10 = vsub.f32 %v2241_v46, %v1705_v22  ;;  %v2243_v21 = vld [vmem:[#allocation17_spill] sm:$0xff]  ;;  %v2245_v53 = vld [vmem:[#allocation19_spill] sm:$0xff] }
 0x199   : > { %v1298_v1 = vpop.eup %1297  ;;  %1317 = vpow2.f32 %v872_v54  ;;  %v970_v25 = vadd.f32 %v1296_v35, %v969_v56  ;;  %v2244_v29 = vsub.f32 %v2243_v21, %v1708_v31  ;;  %v2246_v55 = vsub.f32 %v2245_v53, %v1705_v22 }
 0x19a   : > { %v1300_v24 = vpop.eup %1299  ;;  %1319 = vpow2.f32 %v874_v57  ;;  %v934_v20 = vadd.f32 %v1298_v1, %v933_v39  ;;  %v894_v14 = vmul.f32 1.442695, %v2240_v59  ;;  %v896_v17 = vmul.f32 1.442695, %v2242_v10 }
 0x19b   : > { %v1302_v41 = vpop.eup %1301  ;;  %1321 = vpow2.f32 %v876_v38  ;;  %v971_v2 = vadd.f32 %v1300_v24, %v970_v25  ;;  %v898_v52 = vmul.f32 1.442695, %v2244_v29  ;;  %v900_v38 = vmul.f32 1.442695, %v2246_v55 }
 0x19c   : > { %v1304_v27 = vpop.eup %1303  ;;  %1323 = vpow2.f32 %v878_v37  ;;  %v935_v16 = vadd.f32 %v1302_v41, %v934_v20  ;;  %v2248_v37 = vsub.f32 %v2247_v58, %v1708_v31  ;;  %v2252_v20 = vsub.f32 %v2179_v7, %v1705_v22  ;;  %v2256_v7 = vld [vmem:[#allocation33_spill] sm:$0xff] }
 0x19d   : > { %v1306_v43 = vpop.eup %1305  ;;  %1325 = vpow2.f32 %v880_v62  ;;  %v972_v8 = vadd.f32 %v1304_v27, %v971_v2  ;;  %v2249_v62 = vsub.f32 %v2177_v36, %v1705_v22  ;;  %v2253_v36 = vsub.f32 %v2180_v32, %v1708_v31 }
 0x19e   : > { %v1308_v4 = vpop.eup %1307  ;;  %1327 = vpow2.f32 %v882_v63  ;;  %v936_v45 = vadd.f32 %v1306_v43, %v935_v16  ;;  %v902_v1 = vmul.f32 1.442695, %v2248_v37  ;;  %v2250_v63 = vld [vmem:[#allocation25_spill] sm:$0xff]  ;;  %v908_v2 = vmul.f32 1.442695, %v2252_v20 }
 0x19f   : > { %v1310_v30 = vpop.eup %1309  ;;  %1329 = vpow2.f32 %v884_v19  ;;  %v973_v15 = vadd.f32 %v1308_v4, %v972_v8  ;;  %v904_v39 = vmul.f32 1.442695, %v2249_v62  ;;  %v2251_v41 = vsub.f32 %v2250_v63, %v1708_v31  ;;  %v2260_v62 = vld [vmem:[#allocation38_spill] sm:$0xff] }
 0x1a0   : > { %v1312_v44 = vpop.eup %1311  ;;  %1331 = vpow2.f32 %v886_v47  ;;  %v937_v49 = vadd.f32 %v1310_v30, %v936_v45  ;;  %v910_v47 = vmul.f32 1.442695, %v2253_v36  ;;  %v2257_v12 = vsub.f32 %v2256_v7, %v1708_v31 }
 0x1a1   : > { %v1314_v51 = vpop.eup %1313  ;;  %1333 = vpow2.f32 %v888_v50  ;;  %v974_v54 = vadd.f32 %v1312_v44, %v973_v15  ;;  %v906_v3 = vmul.f32 1.442695, %v2251_v41  ;;  %v912_v50 = vmul.f32 1.442695, %v2255_v9  ;;  %v2262_v9 = vld [vmem:[#allocation36_spill] sm:$0xff] }
 0x1a2   : > { %v1316_v23 = vpop.eup %1315  ;;  %1335 = vpow2.f32 %v890_v34  ;;  %v938_v60 = vadd.f32 %v1314_v51, %v937_v49  ;;  %v914_v40 = vmul.f32 1.442695, %v2257_v12  ;;  %v916_v32 = vmul.f32 1.442695, %v790_v28 }
 0x1a3   : > { %v1318_v57 = vpop.eup %1317  ;;  %1337 = vpow2.f32 %v892_v42  ;;  %v975_v56 = vadd.f32 %v1316_v23, %v974_v54  ;;  %v2258_v42 = vsub.f32 %v1658_v26, %v1708_v31 }
 0x1a4   : > { %v1320_v35 = vpop.eup %1319  ;;  %1339 = vpow2.f32 %v894_v14  ;;  %v939_v25 = vadd.f32 %v1318_v57, %v938_v60 }
 0x1a5   : > { %v1322_v61 = vpop.eup %1321  ;;  %1341 = vpow2.f32 %v896_v17  ;;  %v976_v24 = vadd.f32 %v1320_v35, %v975_v56  ;;  %v918_v45 = vmul.f32 1.442695, %v2258_v42 }
 0x1a6   : > { %v1324_v0 = vpop.eup %1323  ;;  %1343 = vpow2.f32 %v898_v52  ;;  %v940_v27 = vadd.f32 %v1322_v61, %v939_v25  ;;  %v2259_v61 = vld [vmem:[#allocation37_spill] sm:$0xff] }
 0x1a7   : > { %v1326_v19 = vpop.eup %1325  ;;  %1345 = vpow2.f32 %v900_v38  ;;  %v977_v6 = vadd.f32 %v1324_v0, %v976_v24 }
 0x1a8   : > { %v1328_v33 = vpop.eup %1327  ;;  %1347 = vpow2.f32 %v902_v1  ;;  %v941_v16 = vadd.f32 %v1326_v19, %v940_v27 }
 0x1a9   : > { %v1330_v43 = vpop.eup %1329  ;;  %1349 = vpow2.f32 %v904_v39  ;;  %v978_v8 = vadd.f32 %v1328_v33, %v977_v6  ;;  %v2261_v39 = vsub.f32 %v2259_v61, %v2260_v62 }
 0x1aa   : > { %v1332_v4 = vpop.eup %1331  ;;  %1351 = vpow2.f32 %v906_v3  ;;  %v942_v30 = vadd.f32 %v1330_v43, %v941_v16 }
 0x1ab   : > { %v1334_v34 = vpop.eup %1333  ;;  %1353 = vpow2.f32 %v908_v2  ;;  %v979_v13 = vadd.f32 %v1332_v4, %v978_v8  ;;  %v714_v25 = vmul.f32 1.442695, %v2261_v39 }
 0x1ac   : > { %v1336_v11 = vpop.eup %1335  ;;  %1355 = vpow2.f32 %v910_v47  ;;  %v943_v44 = vadd.f32 %v1334_v34, %v942_v30 }
 0x1ad   : > { %v1338_v15 = vpop.eup %1337  ;;  %1357 = vpow2.f32 %v912_v50  ;;  %v980_v48 = vadd.f32 %v1336_v11, %v979_v13 }
 0x1ae   : > { %v1340_v59 = vpop.eup %1339  ;;  %1359 = vpow2.f32 %v914_v40  ;;  %v944_v51 = vadd.f32 %v1338_v15, %v943_v44 }
 0x1af   : > { %v1342_v14 = vpop.eup %1341  ;;  %1361 = vpow2.f32 %v916_v32  ;;  %v981_v46 = vadd.f32 %v1340_v59, %v980_v48  ;;  %v1022_v32 = vld [vmem:[#allocation2] sm:$0x3] }
 0x1b0   : > { %v1344_v18 = vpop.eup %1343  ;;  %1363 = vpow2.f32 %v918_v45  ;;  %v945_v28 = vadd.f32 %v1342_v14, %v944_v51 }
 0x1b1   : > { %v1346_v22 = vpop.eup %1345  ;;  %v982_v10 = vadd.f32 %v1344_v18, %v981_v46  ;;  %1365 = vpow2.f32 %v714_v25 }
 0x1b2   : > { %v1348_v17 = vpop.eup %1347  ;;  %v946_v54 = vadd.f32 %v1346_v22, %v945_v28 }
 0x1b3   : > { %v1350_v49 = vpop.eup %1349  ;;  %v983_v26 = vadd.f32 %v1348_v17, %v982_v10 }
 0x1b4   : > { %v1352_v31 = vpop.eup %1351  ;;  %v947_v21 = vadd.f32 %v1350_v49, %v946_v54 }
 0x1b5   : > { %v1354_v23 = vpop.eup %1353  ;;  %v984_v29 = vadd.f32 %v1352_v31, %v983_v26 }
 0x1b6   : > { %v1356_v52 = vpop.eup %1355  ;;  %v948_v53 = vadd.f32 %v1354_v23, %v947_v21 }
 0x1b7   : > { %v1358_v57 = vpop.eup %1357  ;;  %v985_v55 = vadd.f32 %v1356_v52, %v984_v29 }
 0x1b8   : > { %v1360_v38 = vpop.eup %1359  ;;  %v949_v56 = vadd.f32 %v1358_v57, %v948_v53 }
 0x1b9   : > { %v1362_v60 = vpop.eup %1361  ;;  %v986_v35 = vadd.f32 %v1360_v38, %v985_v55 }
 0x1ba   : > { %v1364_v58 = vpop.eup %1363  ;;  %v950_v37 = vadd.f32 %v1362_v60, %v949_v56 }
 0x1bb   : > { %v987_v1 = vadd.f32 %v1364_v58, %v986_v35  ;;  %v1366_v43 = vpop.eup %1365 }
 0x1bc   : > { %v951_v24 = vrot.slane %v950_v37, 4  ;;  %v716_v16 = vmul.f32 %v1366_v43, %v712_v5 }
 0x1bd   : > { %v988_v0 = vrot.slane %v987_v1, 4 }
 0x1be   : > { %v952_v63 = vadd.f32 %v951_v24, %v950_v37 }
 0x1bf   : > { %v989_v41 = vadd.f32 %v988_v0, %v987_v1 }
 0x1c0   : > { %v953_v3 = vrot.slane %v952_v63, 2 }
 0x1c1   : > { %v990_v19 = vrot.slane %v989_v41, 2 }
 0x1c2   : > { %v954_v20 = vadd.f32 %v953_v3, %v952_v63 }
 0x1c3   : > { %v991_v2 = vadd.f32 %v990_v19, %v989_v41 }
 0x1c4   : > { %v955_v27 = vrot.slane %v954_v20, 1 }
 0x1c5   : > { %v992_v6 = vrot.slane %v991_v2, 1 }
 0x1c6   : > { %v956_v33 = vadd.f32 %v955_v27, %v954_v20 }
 0x1c7   : > { %v993_v36 = vadd.f32 %v992_v6, %v991_v2 }
 0x1c9   : > { %v996_v47 = vcombine.low %v956_v33, %v993_v36 }
 0x1cb   : > { %v1003_v50 = vrot.slane %v996_v47, %v2262_v9 }
 0x1cd   : > { %v1010_v8 = vrot.slane %v1003_v50, %v2262_v9 }
 0x1cf   : > { %v1012_v4 = vadd.f32 %v1010_v8, %v716_v16 }
 0x1d1   : > { %1017 = vst.msk [vmem:[#allocation3] sm:$0x3] %vm1492_vm0, %v1012_v4 }
 0x1d8   : > { %v1023_v12 = vld [vmem:[#allocation3] sm:$0x3] }
 0x1d9   : > { %1367 = vlog2.f32 %v1023_v12 }
 0x1e3   : > { %v1368_v40 = vpop.eup %1367 }
 0x1e4   : > { %v1025_v34 = vmul.f32 0.6931472, %v1368_v40 }
 0x1e6   : > { %v1026_v30 = vadd.f32 %v1025_v34, %v1022_v32 }
 0x1e8   : > { %1027 = vst.msk [vmem:[%s189_s23] sm:$0x3] %vm1492_vm0, %v1026_v30 }
 0x1e9 PF: > { %s12_s11 = sadd.s32 1, %s1391_s11   ;;  %s2264_s9 = smov %s1387_s10 }
 0x1ea   : > { %p9_p5 = scmp.ge.s32.totalorder %s12_s11, 4   ;;  %s2265_s10 = smov %s2267_s12 }
 0x1ec   :  { %11 = sbr.rel (!%p9_p5) target bundleno = 2 (0x2), region = 69 }

// kernel: non_local_block.6
= control target key start
LH: loop header
LB: loop body
LE: loop exit
PB: predicated region body
PF: predicated region fallthrough
CT: control target
= control target key end

     0   :  { %s2118_s15 = smov 0   ;;  %s2120_s16 = smov 0   ;;  %s2326_s0 = inlined_call_operand.vmem [shape: bf16[2,256,128], index: 0, kind: input, shape index: {}]   ;;  %s2327_s1 = inlined_call_operand.vmem [shape: bf16[2,128,256], index: 1, kind: input, shape index: {}]   ;;  %s2328_s2 = inlined_call_operand.vmem [shape: bf16[2,256,128], index: 2, kind: input, shape index: {}]   ;;  %s2329_s3 = inlined_call_operand.vmem [shape: f32[2,1,256], index: 3, kind: input, shape index: {}]   ;;  %s2330_s4 = inlined_call_operand.vmem [shape: bf16[2,256,128], index: 4, kind: output, shape index: {}]  }
   0x1   :  { %s2122_s17 = smov 0  }
   0x2 LB: > { %s26_s18 = sadd.s32 1, %s2086_s16  ;;  %p1524_p0 = scmp.ge.s32.totalorder %s2090_s17, 1  ;;  %s2090_s17 = sphi %s2122_s17, %s14_s17   ;;  %s2086_s16 = sphi %s2120_s16, %s2332_s16   ;;  %s2082_s15 = sphi %s2118_s15, %s2331_s15  }
   0x3   : > { %p28_p1 = scmp.ge.s32.totalorder %s26_s18, 2  ;;  %p212_p2 = scmp.lt.s32.totalorder %s2090_s17, 3 }
   0x5   : > { %s2334_s18 = smov (%p28_p1, %s26_s18), 0  ;;  %p213_p3 = pnand %p1524_p0, %p212_p2 }
   0x6   : > { %p261_p4 = scmp.lt.s32.totalorder (!%p213_p3), %s2082_s15, 1  ;;  %v2092_v0 = vmov (!%p213_p3), 0   ;;  %v714_v49 = vlaneseq (!%p213_p3) }
   0x7   : > { %216 = sbr.rel (%p213_p3) target bundleno = 623 (0x26f), region = 36  ;;  %551 = vmatprep.mubr.bf16.mxu0 (!%p213_p3), %v2092_v0 }
   0x8   : > { %v715_v50 = vshrl.u32 (!%p213_p3), %v714_v49, 7 }
   0xa   : > { %v716_v51 = vsub.s32 (!%p213_p3), 0, %v715_v50  ;;  %v720_v53 = vsub.s32 (!%p213_p3), 1, %v715_v50 }
   0xe   : > { %s2336_s15 = smov (!%p261_p4, %s2082_s15), 1 }
   0xf   : > { %s2140_s19 = sshll.u32 %s2336_s15, 7  ;;  %s1531_s29 = sshll.u32 %s2336_s15, 1 }
  0x10   : > { %s2146_s22 = scalar_lea.vmem %s2327_s1, %s2140_s19  ;;  %s2159_s25 = scalar_lea.vmem %s2326_s0, %s2140_s19 }
  0x11   : > { %v1884_v1 = vld [vmem:[%s2146_s22 + $0x4] ss:$8 sps:$4 sm:$0xff]   ;;  %v1886_v2 = vld [vmem:[%s2146_s22] ss:$8 sps:$4 sm:$0xff]   ;;  %v1887_v3 = vld [vmem:[%s2146_s22 + $0x14] ss:$8 sps:$4 sm:$0xff]   ;;  %s2172_s28 = scalar_lea.vmem %s2328_s2, %s2140_s19  ;;  %s283_s6 = scalar_lea.vmem %s2329_s3, %s1531_s29 }
  0x12   : > { %519 = vmatprep.subr.bf16.mxu0 %v1884_v1  ;;  %v1889_v4 = vld [vmem:[%s2146_s22 + $0x10] ss:$8 sps:$4 sm:$0xff]   ;;  %v1890_v5 = vld [vmem:[%s2146_s22 + $0x24] ss:$8 sps:$4 sm:$0xff]   ;;  %v1892_v6 = vld [vmem:[%s2146_s22 + $0x20] ss:$8 sps:$4 sm:$0xff]   ;;  %s2299_s9 = scalar_lea.vmem %s2330_s4, %s2140_s19 }
  0x13   : > { %520 = vmatpush1.bf16.msra.mxu0 %v1886_v2  ;;  %v1893_v7 = vld [vmem:[%s2146_s22 + $0x34] ss:$8 sps:$4 sm:$0xff]   ;;  %v1895_v8 = vld [vmem:[%s2146_s22 + $0x30] ss:$8 sps:$4 sm:$0xff]   ;;  %v1896_v9 = vld [vmem:[%s2146_s22 + $0x44] ss:$8 sps:$4 sm:$0xff]  }
  0x14   : > { %521 = vmatprep.subr.bf16.mxu0 %v1887_v3  ;;  %v1898_v10 = vld [vmem:[%s2146_s22 + $0x40] ss:$8 sps:$4 sm:$0xff]   ;;  %v1899_v11 = vld [vmem:[%s2146_s22 + $0x54] ss:$8 sps:$4 sm:$0xff]   ;;  %v1901_v12 = vld [vmem:[%s2146_s22 + $0x50] ss:$8 sps:$4 sm:$0xff]  }
  0x15   : > { %v1902_v13 = vld [vmem:[%s2146_s22 + $0x64] ss:$8 sps:$4 sm:$0xff]   ;;  %v1904_v14 = vld [vmem:[%s2146_s22 + $0x60] ss:$8 sps:$4 sm:$0xff]   ;;  %v1905_v15 = vld [vmem:[%s2146_s22 + $0x74] ss:$8 sps:$4 sm:$0xff]  }
  0x16   : > { %v1907_v16 = vld [vmem:[%s2146_s22 + $0x70] ss:$8 sps:$4 sm:$0xff]   ;;  %v1924_v17 = vld [vmem:[%s2172_s28 + $0x40] sm:$0xff]   ;;  %v1926_v20 = vld [vmem:[%s2172_s28 + $0x48] sm:$0xff]  }
  0x17   : > { %522 = vmatpush1.bf16.msra.mxu0 %v1889_v4  ;;  %v1908_v18 = vld [vmem:[%s2159_s25] sm:$0xff]   ;;  %1747 = vmatprep.subr.bf16.mxu1 %v1924_v17  ;;  %v1927_v21 = vld [vmem:[%s2172_s28 + $0x8] sm:$0xff]   ;;  %v1928_v22 = vld [vmem:[%s2172_s28 + $0x50] sm:$0xff]  }
  0x18   : > { %523 = vmatprep.subr.bf16.mxu0 %v1890_v5  ;;  %v1925_v19 = vld [vmem:[%s2172_s28] sm:$0xff]   ;;  %v1929_v23 = vld [vmem:[%s2172_s28 + $0x10] sm:$0xff]   ;;  %v1909_v24 = vld [vmem:[%s2159_s25 + $0x8] sm:$0xff]  }
  0x19   : > { %1748 = vmatpush3.bf16.msra.mxu1 %v1925_v19  ;;  %v1910_v25 = vld [vmem:[%s2159_s25 + $0x10] sm:$0xff]   ;;  %v1911_v26 = vld [vmem:[%s2159_s25 + $0x18] sm:$0xff]   ;;  %v1912_v27 = vld [vmem:[%s2159_s25 + $0x20] sm:$0xff]  }
  0x1a   : > { %1749 = vmatprep.subr.bf16.mxu1 %v1926_v20  ;;  %v1913_v28 = vld [vmem:[%s2159_s25 + $0x28] sm:$0xff]   ;;  %v1914_v29 = vld [vmem:[%s2159_s25 + $0x30] sm:$0xff]   ;;  %v1915_v30 = vld [vmem:[%s2159_s25 + $0x38] sm:$0xff]  }
  0x1b   : > { %524 = vmatpush1.bf16.msra.mxu0 %v1892_v6  ;;  %v1916_v31 = vld [vmem:[%s2159_s25 + $0x40] sm:$0xff]   ;;  %v1917_v32 = vld [vmem:[%s2159_s25 + $0x48] sm:$0xff]   ;;  %v1918_v33 = vld [vmem:[%s2159_s25 + $0x50] sm:$0xff]  }
  0x1c   : > { %525 = vmatprep.subr.bf16.mxu0 %v1893_v7  ;;  %v1930_v34 = vld [vmem:[%s2172_s28 + $0x58] sm:$0xff]   ;;  %v1932_v37 = vld [vmem:[%s2172_s28 + $0x60] sm:$0xff]   ;;  %v1934_v39 = vld [vmem:[%s2172_s28 + $0x68] sm:$0xff]  }
  0x1d   : > { %1750 = vmatpush3.bf16.msra.mxu1 %v1927_v21  ;;  %v1919_v35 = vld [vmem:[%s2159_s25 + $0x58] sm:$0xff]   ;;  %v1933_v38 = vld [vmem:[%s2172_s28 + $0x20] sm:$0xff]   ;;  %v1935_v41 = vld [vmem:[%s2172_s28 + $0x28] sm:$0xff]  }
  0x1e   : > { %1751 = vmatprep.subr.bf16.mxu1 %v1928_v22  ;;  %v1931_v36 = vld [vmem:[%s2172_s28 + $0x18] sm:$0xff]   ;;  %v1920_v40 = vld [vmem:[%s2159_s25 + $0x60] sm:$0xff]   ;;  %v1936_v42 = vld [vmem:[%s2172_s28 + $0x70] sm:$0xff]  }
  0x1f   : > { %526 = vmatpush1.bf16.msra.mxu0 %v1895_v8  ;;  %v1937_v43 = vld [vmem:[%s2172_s28 + $0x30] sm:$0xff]   ;;  %v1938_v44 = vld [vmem:[%s2172_s28 + $0x78] sm:$0xff]   ;;  %v1921_v45 = vld [vmem:[%s2159_s25 + $0x68] sm:$0xff]  }
  0x20   : > { %527 = vmatprep.subr.bf16.mxu0 %v1896_v9  ;;  %v1939_v46 = vld [vmem:[%s2172_s28 + $0x38] sm:$0xff]   ;;  %v1922_v47 = vld [vmem:[%s2159_s25 + $0x70] sm:$0xff]   ;;  %v712_v52 = vld [vmem:[%s283_s6] sm:$0x3] }
  0x21   : > { %1752 = vmatpush3.bf16.msra.mxu1 %v1929_v23  ;;  %v1923_v48 = vld [vmem:[%s2159_s25 + $0x78] sm:$0xff]   ;;  %v2227_v54 = vrot.slane %v712_v52, %v716_v51  ;;  %v2229_v55 = vrot.slane %v712_v52, %v720_v53 }
  0x22   : > { %1753 = vmatprep.subr.bf16.mxu1 %v1930_v34 }
  0x23   : > { %528 = vmatpush1.bf16.msra.mxu0 %v1898_v10 }
  0x24   : > { %529 = vmatprep.subr.bf16.mxu0 %v1899_v11 }
  0x25   : > { %1754 = vmatpush3.bf16.msra.mxu1 %v1931_v36 }
  0x26   : > { %1755 = vmatprep.subr.bf16.mxu1 %v1932_v37 }
  0x27   : > { %530 = vmatpush1.bf16.msra.mxu0 %v1901_v12 }
  0x28   : > { %531 = vmatprep.subr.bf16.mxu0 %v1902_v13 }
  0x29   : > { %1756 = vmatpush3.bf16.msra.mxu1 %v1933_v38 }
  0x2a   : > { %1757 = vmatprep.subr.bf16.mxu1 %v1934_v39 }
  0x2b   : > { %532 = vmatpush1.bf16.msra.mxu0 %v1904_v14 }
  0x2c   : > { %533 = vmatprep.subr.bf16.mxu0 %v1905_v15 }
  0x2d   : > { %1758 = vmatpush3.bf16.msra.mxu1 %v1935_v41 }
  0x2e   : > { %1759 = vmatprep.subr.bf16.mxu1 %v1936_v42 }
  0x2f   : > { %534 = vmatpush1.bf16.msra.mxu0 %v1907_v16 }
  0x31   : > { %1760 = vmatpush3.bf16.msra.mxu1 %v1937_v43 }
  0x32   : > { %552 = vmatmul.mubr.bf16.vlgmr.msra.gmra.mrb[0].mxu0 %v1908_v18  ;;  %1761 = vmatprep.subr.bf16.mxu1 %v1938_v44 }
  0x33   : > { %561 = vmatprep.mubr.bf16.mxu0 %v2092_v0 }
  0x35   : > { %1762 = vmatpush3.bf16.msra.mxu1 %v1939_v46 }
  0x3a   : > { %562 = vmatmul.mubr.bf16.gmra.mrb[4].mxu0 %v1909_v24 }
  0x3b   : > { %571 = vmatprep.mubr.bf16.mxu0 %v2092_v0 }
  0x42   : > { %572 = vmatmul.mubr.bf16.gmra.mrb[8].mxu0 %v1910_v25 }
  0x43   : > { %581 = vmatprep.mubr.bf16.mxu0 %v2092_v0 }
  0x4a   : > { %582 = vmatmul.mubr.bf16.gmra.mrb[12].mxu0 %v1911_v26 }
  0x4b   : > { %591 = vmatprep.mubr.bf16.mxu0 %v2092_v0 }
  0x52   : > { %592 = vmatmul.mubr.bf16.gmra.mrb[16].mxu0 %v1912_v27 }
  0x53   : > { %601 = vmatprep.mubr.bf16.mxu0 %v2092_v0 }
  0x5a   : > { %602 = vmatmul.mubr.bf16.gmra.mrb[20].mxu0 %v1913_v28 }
  0x5b   : > { %611 = vmatprep.mubr.bf16.mxu0 %v2092_v0 }
  0x62   : > { %612 = vmatmul.mubr.bf16.gmra.mrb[24].mxu0 %v1914_v29 }
  0x63   : > { %621 = vmatprep.mubr.bf16.mxu0 %v2092_v0 }
  0x6a   : > { %622 = vmatmul.mubr.bf16.gmra.mrb[28].mxu0 %v1915_v30 }
  0x6b   : > { %631 = vmatprep.mubr.bf16.mxu0 %v2092_v0 }
  0x72   : > { %632 = vmatmul.mubr.bf16.gmra.mrb[32].mxu0 %v1916_v31 }
  0x73   : > { %641 = vmatprep.mubr.bf16.mxu0 %v2092_v0 }
  0x7a   : > { %642 = vmatmul.mubr.bf16.gmra.mrb[36].mxu0 %v1917_v32 }
  0x7b   : > { %651 = vmatprep.mubr.bf16.mxu0 %v2092_v0 }
  0x82   : > { %652 = vmatmul.mubr.bf16.gmra.mrb[40].mxu0 %v1918_v33 }
  0x83   : > { %661 = vmatprep.mubr.bf16.mxu0 %v2092_v0 }
  0x8a   : > { %662 = vmatmul.mubr.bf16.gmra.mrb[44].mxu0 %v1919_v35 }
  0x8b   : > { %671 = vmatprep.mubr.bf16.mxu0 %v2092_v0 }
  0x92   : > { %672 = vmatmul.mubr.bf16.gmra.mrb[48].mxu0 %v1920_v40 }
  0x93   : > { %681 = vmatprep.mubr.bf16.mxu0 %v2092_v0 }
  0x9a   : > { %682 = vmatmul.mubr.bf16.gmra.mrb[52].mxu0 %v1921_v45 }
  0x9b   : > { %691 = vmatprep.mubr.bf16.mxu0 %v2092_v0 }
  0xa2   : > { %692 = vmatmul.mubr.bf16.gmra.mrb[56].mxu0 %v1922_v47 }
  0xa3   : > { %701 = vmatprep.mubr.bf16.mxu0 %v2092_v0 }
  0xaa   : > { %702 = vmatmul.mubr.bf16.gmra.mrb[60].mxu0 %v1923_v48 }
 0x105   : > { %v553_v56 = vpop.f32.mrb[0].mxu0 }
 0x106   : > { %v724_v57 = vsub.f32 %v553_v56, %v2227_v54  ;;  %v555_v58 = vpop.f32.mrb[1].mxu0 }
 0x107   : > { %v725_v59 = vsub.f32 %v555_v58, %v2229_v55  ;;  %v557_v60 = vpop.f32.mrb[2].mxu0 }
 0x108   : > { %v788_v61 = vmul.f32 1.442695, %v724_v57  ;;  %v726_v62 = vsub.f32 %v557_v60, %v2227_v54  ;;  %v559_v63 = vpop.f32.mrb[3].mxu0 }
 0x109   : > { %v790_v0 = vmul.f32 1.442695, %v725_v59  ;;  %v727_v1 = vsub.f32 %v559_v63, %v2229_v55 }
 0x10a   : > { %1940 = vpow2.f32 %v788_v61  ;;  %v792_v2 = vmul.f32 1.442695, %v726_v62 }
 0x10b   : > { %1942 = vpow2.f32 %v790_v0  ;;  %v794_v3 = vmul.f32 1.442695, %v727_v1 }
 0x10c   : > { %1944 = vpow2.f32 %v792_v2 }
 0x10d   : > { %1946 = vpow2.f32 %v794_v3  ;;  %v563_v4 = vpop.f32.mrb[4].mxu0 }
 0x10e   : > { %v728_v5 = vsub.f32 %v563_v4, %v2227_v54  ;;  %v565_v6 = vpop.f32.mrb[5].mxu0 }
 0x10f   : > { %v729_v7 = vsub.f32 %v565_v6, %v2229_v55  ;;  %v567_v8 = vpop.f32.mrb[6].mxu0 }
 0x110   : > { %v796_v9 = vmul.f32 1.442695, %v728_v5  ;;  %v730_v10 = vsub.f32 %v567_v8, %v2227_v54  ;;  %v569_v11 = vpop.f32.mrb[7].mxu0 }
 0x111   : > { %v798_v12 = vmul.f32 1.442695, %v729_v7  ;;  %v731_v13 = vsub.f32 %v569_v11, %v2229_v55 }
 0x112   : > { %1948 = vpow2.f32 %v796_v9  ;;  %v800_v14 = vmul.f32 1.442695, %v730_v10 }
 0x113   : > { %1950 = vpow2.f32 %v798_v12  ;;  %v802_v15 = vmul.f32 1.442695, %v731_v13 }
 0x114   : > { %v1941_v16 = vpop.eup %1940  ;;  %1952 = vpow2.f32 %v800_v14 }
 0x115   : > { %v1943_v17 = vpop.eup %1942  ;;  %1954 = vpow2.f32 %v802_v15  ;;  %v573_v18 = vpop.f32.mrb[8].mxu0 }
 0x116   : > { %v1945_v19 = vpop.eup %1944  ;;  %v732_v20 = vsub.f32 %v573_v18, %v2227_v54  ;;  %v575_v21 = vpop.f32.mrb[9].mxu0 }
 0x117   : > { %v1947_v22 = vpop.eup %1946  ;;  %v733_v23 = vsub.f32 %v575_v21, %v2229_v55  ;;  %v577_v24 = vpop.f32.mrb[10].mxu0  ;;  %v916_v25 = vpack.c.bf16 %v1945_v19, %v1941_v16 }
 0x118   : > { %v804_v26 = vmul.f32 1.442695, %v732_v20  ;;  %v734_v27 = vsub.f32 %v577_v24, %v2227_v54  ;;  %v579_v28 = vpop.f32.mrb[11].mxu0  ;;  %v917_v29 = vpack.c.bf16 %v1947_v22, %v1943_v17 }
 0x119   : > { %v806_v30 = vmul.f32 1.442695, %v733_v23  ;;  %v735_v31 = vsub.f32 %v579_v28, %v2229_v55 }
 0x11a   : > { %1956 = vpow2.f32 %v804_v26  ;;  %v808_v32 = vmul.f32 1.442695, %v734_v27  ;;  %1108 = vmatprep.mubr.bf16.mxu1 %v917_v29 }
 0x11b   : > { %1958 = vpow2.f32 %v806_v30  ;;  %v810_v33 = vmul.f32 1.442695, %v735_v31  ;;  %1109 = vmatmul.mubr.bf16.vlgmr.msra.gmra.mrb[0].mxu1 %v916_v25 }
 0x11c   : > { %v1949_v34 = vpop.eup %1948  ;;  %1960 = vpow2.f32 %v808_v32 }
 0x11d   : > { %v1951_v35 = vpop.eup %1950  ;;  %1962 = vpow2.f32 %v810_v33  ;;  %v583_v36 = vpop.f32.mrb[12].mxu0 }
 0x11e   : > { %v1953_v37 = vpop.eup %1952  ;;  %v736_v38 = vsub.f32 %v583_v36, %v2227_v54  ;;  %v585_v39 = vpop.f32.mrb[13].mxu0 }
 0x11f   : > { %v1955_v40 = vpop.eup %1954  ;;  %v737_v41 = vsub.f32 %v585_v39, %v2229_v55  ;;  %v587_v42 = vpop.f32.mrb[14].mxu0  ;;  %v918_v43 = vpack.c.bf16 %v1953_v37, %v1949_v34 }
 0x120   : > { %v812_v44 = vmul.f32 1.442695, %v736_v38  ;;  %v738_v45 = vsub.f32 %v587_v42, %v2227_v54  ;;  %v589_v46 = vpop.f32.mrb[15].mxu0  ;;  %v919_v47 = vpack.c.bf16 %v1955_v40, %v1951_v35 }
 0x121   : > { %v814_v48 = vmul.f32 1.442695, %v737_v41  ;;  %v739_v49 = vsub.f32 %v589_v46, %v2229_v55 }
 0x122   : > { %1964 = vpow2.f32 %v812_v44  ;;  %v816_v50 = vmul.f32 1.442695, %v738_v45  ;;  %1116 = vmatprep.mubr.bf16.mxu1 %v919_v47 }
 0x123   : > { %1966 = vpow2.f32 %v814_v48  ;;  %v818_v51 = vmul.f32 1.442695, %v739_v49  ;;  %1117 = vmatmul.mubr.bf16.gmra.mrb[4].mxu1 %v918_v43 }
 0x124   : > { %v1957_v52 = vpop.eup %1956  ;;  %1968 = vpow2.f32 %v816_v50 }
 0x125   : > { %v1959_v53 = vpop.eup %1958  ;;  %1970 = vpow2.f32 %v818_v51  ;;  %v593_v56 = vpop.f32.mrb[16].mxu0 }
 0x126   : > { %v1961_v57 = vpop.eup %1960  ;;  %v740_v58 = vsub.f32 %v593_v56, %v2227_v54  ;;  %v595_v59 = vpop.f32.mrb[17].mxu0 }
 0x127   : > { %v1963_v60 = vpop.eup %1962  ;;  %v741_v61 = vsub.f32 %v595_v59, %v2229_v55  ;;  %v597_v62 = vpop.f32.mrb[18].mxu0  ;;  %v920_v63 = vpack.c.bf16 %v1961_v57, %v1957_v52 }
 0x128   : > { %v820_v0 = vmul.f32 1.442695, %v740_v58  ;;  %v742_v1 = vsub.f32 %v597_v62, %v2227_v54  ;;  %v599_v2 = vpop.f32.mrb[19].mxu0  ;;  %v921_v3 = vpack.c.bf16 %v1963_v60, %v1959_v53 }
 0x129   : > { %v822_v4 = vmul.f32 1.442695, %v741_v61  ;;  %v743_v5 = vsub.f32 %v599_v2, %v2229_v55 }
 0x12a   : > { %1972 = vpow2.f32 %v820_v0  ;;  %v824_v6 = vmul.f32 1.442695, %v742_v1  ;;  %1124 = vmatprep.mubr.bf16.mxu1 %v921_v3 }
 0x12b   : > { %1974 = vpow2.f32 %v822_v4  ;;  %v826_v7 = vmul.f32 1.442695, %v743_v5  ;;  %1125 = vmatmul.mubr.bf16.gmra.mrb[8].mxu1 %v920_v63 }
 0x12c   : > { %v1965_v8 = vpop.eup %1964  ;;  %1976 = vpow2.f32 %v824_v6 }
 0x12d   : > { %v1967_v9 = vpop.eup %1966  ;;  %1978 = vpow2.f32 %v826_v7  ;;  %v603_v10 = vpop.f32.mrb[20].mxu0 }
 0x12e   : > { %v1969_v11 = vpop.eup %1968  ;;  %v744_v12 = vsub.f32 %v603_v10, %v2227_v54  ;;  %v605_v13 = vpop.f32.mrb[21].mxu0 }
 0x12f   : > { %v1971_v14 = vpop.eup %1970  ;;  %v745_v15 = vsub.f32 %v605_v13, %v2229_v55  ;;  %v607_v16 = vpop.f32.mrb[22].mxu0  ;;  %v922_v17 = vpack.c.bf16 %v1969_v11, %v1965_v8 }
 0x130   : > { %v828_v18 = vmul.f32 1.442695, %v744_v12  ;;  %v746_v19 = vsub.f32 %v607_v16, %v2227_v54  ;;  %v609_v20 = vpop.f32.mrb[23].mxu0  ;;  %v923_v21 = vpack.c.bf16 %v1971_v14, %v1967_v9 }
 0x131   : > { %v830_v22 = vmul.f32 1.442695, %v745_v15  ;;  %v747_v23 = vsub.f32 %v609_v20, %v2229_v55 }
 0x132   : > { %1980 = vpow2.f32 %v828_v18  ;;  %v832_v24 = vmul.f32 1.442695, %v746_v19  ;;  %1132 = vmatprep.mubr.bf16.mxu1 %v923_v21 }
 0x133   : > { %1982 = vpow2.f32 %v830_v22  ;;  %v834_v25 = vmul.f32 1.442695, %v747_v23  ;;  %1133 = vmatmul.mubr.bf16.gmra.mrb[12].mxu1 %v922_v17 }
 0x134   : > { %v1973_v26 = vpop.eup %1972  ;;  %1984 = vpow2.f32 %v832_v24 }
 0x135   : > { %v1975_v27 = vpop.eup %1974  ;;  %1986 = vpow2.f32 %v834_v25  ;;  %v613_v28 = vpop.f32.mrb[24].mxu0 }
 0x136   : > { %v1977_v29 = vpop.eup %1976  ;;  %v748_v30 = vsub.f32 %v613_v28, %v2227_v54  ;;  %v615_v31 = vpop.f32.mrb[25].mxu0 }
 0x137   : > { %v1979_v32 = vpop.eup %1978  ;;  %v749_v33 = vsub.f32 %v615_v31, %v2229_v55  ;;  %v617_v34 = vpop.f32.mrb[26].mxu0  ;;  %v924_v35 = vpack.c.bf16 %v1977_v29, %v1973_v26 }
 0x138   : > { %v836_v36 = vmul.f32 1.442695, %v748_v30  ;;  %v750_v37 = vsub.f32 %v617_v34, %v2227_v54  ;;  %v619_v38 = vpop.f32.mrb[27].mxu0  ;;  %v925_v39 = vpack.c.bf16 %v1979_v32, %v1975_v27 }
 0x139   : > { %v838_v40 = vmul.f32 1.442695, %v749_v33  ;;  %v751_v41 = vsub.f32 %v619_v38, %v2229_v55 }
 0x13a   : > { %1988 = vpow2.f32 %v836_v36  ;;  %v840_v42 = vmul.f32 1.442695, %v750_v37  ;;  %1140 = vmatprep.mubr.bf16.mxu1 %v925_v39 }
 0x13b   : > { %1990 = vpow2.f32 %v838_v40  ;;  %v842_v43 = vmul.f32 1.442695, %v751_v41  ;;  %1141 = vmatmul.mubr.bf16.gmra.mrb[16].mxu1 %v924_v35 }
 0x13c   : > { %v1981_v44 = vpop.eup %1980  ;;  %1992 = vpow2.f32 %v840_v42 }
 0x13d   : > { %v1983_v45 = vpop.eup %1982  ;;  %1994 = vpow2.f32 %v842_v43  ;;  %v623_v46 = vpop.f32.mrb[28].mxu0 }
 0x13e   : > { %v1985_v47 = vpop.eup %1984  ;;  %v752_v48 = vsub.f32 %v623_v46, %v2227_v54  ;;  %v625_v49 = vpop.f32.mrb[29].mxu0 }
 0x13f   : > { %v1987_v50 = vpop.eup %1986  ;;  %v753_v51 = vsub.f32 %v625_v49, %v2229_v55  ;;  %v627_v52 = vpop.f32.mrb[30].mxu0  ;;  %v926_v53 = vpack.c.bf16 %v1985_v47, %v1981_v44 }
 0x140   : > { %v844_v56 = vmul.f32 1.442695, %v752_v48  ;;  %v754_v57 = vsub.f32 %v627_v52, %v2227_v54  ;;  %v629_v58 = vpop.f32.mrb[31].mxu0  ;;  %v927_v59 = vpack.c.bf16 %v1987_v50, %v1983_v45 }
 0x141   : > { %v846_v60 = vmul.f32 1.442695, %v753_v51  ;;  %v755_v61 = vsub.f32 %v629_v58, %v2229_v55 }
 0x142   : > { %1996 = vpow2.f32 %v844_v56  ;;  %v848_v62 = vmul.f32 1.442695, %v754_v57  ;;  %1148 = vmatprep.mubr.bf16.mxu1 %v927_v59 }
 0x143   : > { %1998 = vpow2.f32 %v846_v60  ;;  %v850_v63 = vmul.f32 1.442695, %v755_v61  ;;  %1149 = vmatmul.mubr.bf16.gmra.mrb[20].mxu1 %v926_v53 }
 0x144   : > { %v1989_v0 = vpop.eup %1988  ;;  %2000 = vpow2.f32 %v848_v62 }
 0x145   : > { %v1991_v1 = vpop.eup %1990  ;;  %2002 = vpow2.f32 %v850_v63  ;;  %v633_v2 = vpop.f32.mrb[32].mxu0 }
 0x146   : > { %v1993_v3 = vpop.eup %1992  ;;  %v756_v4 = vsub.f32 %v633_v2, %v2227_v54  ;;  %v635_v5 = vpop.f32.mrb[33].mxu0 }
 0x147   : > { %v1995_v6 = vpop.eup %1994  ;;  %v757_v7 = vsub.f32 %v635_v5, %v2229_v55  ;;  %v637_v8 = vpop.f32.mrb[34].mxu0  ;;  %v928_v9 = vpack.c.bf16 %v1993_v3, %v1989_v0 }
 0x148   : > { %v852_v10 = vmul.f32 1.442695, %v756_v4  ;;  %v758_v11 = vsub.f32 %v637_v8, %v2227_v54  ;;  %v639_v12 = vpop.f32.mrb[35].mxu0  ;;  %v929_v13 = vpack.c.bf16 %v1995_v6, %v1991_v1 }
 0x149   : > { %v854_v14 = vmul.f32 1.442695, %v757_v7  ;;  %v759_v15 = vsub.f32 %v639_v12, %v2229_v55 }
 0x14a   : > { %2004 = vpow2.f32 %v852_v10  ;;  %v856_v16 = vmul.f32 1.442695, %v758_v11  ;;  %1156 = vmatprep.mubr.bf16.mxu1 %v929_v13 }
 0x14b   : > { %2006 = vpow2.f32 %v854_v14  ;;  %v858_v17 = vmul.f32 1.442695, %v759_v15  ;;  %1157 = vmatmul.mubr.bf16.gmra.mrb[24].mxu1 %v928_v9 }
 0x14c   : > { %v1997_v18 = vpop.eup %1996  ;;  %2008 = vpow2.f32 %v856_v16 }
 0x14d   : > { %v1999_v19 = vpop.eup %1998  ;;  %2010 = vpow2.f32 %v858_v17  ;;  %v643_v20 = vpop.f32.mrb[36].mxu0 }
 0x14e   : > { %v2001_v21 = vpop.eup %2000  ;;  %v760_v22 = vsub.f32 %v643_v20, %v2227_v54  ;;  %v645_v23 = vpop.f32.mrb[37].mxu0 }
 0x14f   : > { %v2003_v24 = vpop.eup %2002  ;;  %v761_v25 = vsub.f32 %v645_v23, %v2229_v55  ;;  %v647_v26 = vpop.f32.mrb[38].mxu0  ;;  %v930_v27 = vpack.c.bf16 %v2001_v21, %v1997_v18 }
 0x150   : > { %v860_v28 = vmul.f32 1.442695, %v760_v22  ;;  %v762_v29 = vsub.f32 %v647_v26, %v2227_v54  ;;  %v649_v30 = vpop.f32.mrb[39].mxu0  ;;  %v931_v31 = vpack.c.bf16 %v2003_v24, %v1999_v19 }
 0x151   : > { %v862_v32 = vmul.f32 1.442695, %v761_v25  ;;  %v763_v33 = vsub.f32 %v649_v30, %v2229_v55 }
 0x152   : > { %2012 = vpow2.f32 %v860_v28  ;;  %v864_v34 = vmul.f32 1.442695, %v762_v29  ;;  %1164 = vmatprep.mubr.bf16.mxu1 %v931_v31 }
 0x153   : > { %2014 = vpow2.f32 %v862_v32  ;;  %v866_v35 = vmul.f32 1.442695, %v763_v33  ;;  %1165 = vmatmul.mubr.bf16.gmra.mrb[28].mxu1 %v930_v27 }
 0x154   : > { %v2005_v36 = vpop.eup %2004  ;;  %2016 = vpow2.f32 %v864_v34 }
 0x155   : > { %v2007_v37 = vpop.eup %2006  ;;  %2018 = vpow2.f32 %v866_v35  ;;  %v653_v38 = vpop.f32.mrb[40].mxu0 }
 0x156   : > { %v2009_v39 = vpop.eup %2008  ;;  %v764_v40 = vsub.f32 %v653_v38, %v2227_v54  ;;  %v655_v41 = vpop.f32.mrb[41].mxu0 }
 0x157   : > { %v2011_v42 = vpop.eup %2010  ;;  %v765_v43 = vsub.f32 %v655_v41, %v2229_v55  ;;  %v657_v44 = vpop.f32.mrb[42].mxu0  ;;  %v932_v45 = vpack.c.bf16 %v2009_v39, %v2005_v36 }
 0x158   : > { %v868_v46 = vmul.f32 1.442695, %v764_v40  ;;  %v766_v47 = vsub.f32 %v657_v44, %v2227_v54  ;;  %v659_v48 = vpop.f32.mrb[43].mxu0  ;;  %v933_v49 = vpack.c.bf16 %v2011_v42, %v2007_v37 }
 0x159   : > { %v870_v50 = vmul.f32 1.442695, %v765_v43  ;;  %v767_v51 = vsub.f32 %v659_v48, %v2229_v55 }
 0x15a   : > { %2020 = vpow2.f32 %v868_v46  ;;  %v872_v52 = vmul.f32 1.442695, %v766_v47  ;;  %1172 = vmatprep.mubr.bf16.mxu1 %v933_v49 }
 0x15b   : > { %2022 = vpow2.f32 %v870_v50  ;;  %v874_v53 = vmul.f32 1.442695, %v767_v51  ;;  %1173 = vmatmul.mubr.bf16.gmra.mrb[32].mxu1 %v932_v45 }
 0x15c   : > { %v2013_v56 = vpop.eup %2012  ;;  %2024 = vpow2.f32 %v872_v52 }
 0x15d   : > { %v2015_v57 = vpop.eup %2014  ;;  %2026 = vpow2.f32 %v874_v53  ;;  %v663_v58 = vpop.f32.mrb[44].mxu0 }
 0x15e   : > { %v2017_v59 = vpop.eup %2016  ;;  %v768_v60 = vsub.f32 %v663_v58, %v2227_v54  ;;  %v665_v61 = vpop.f32.mrb[45].mxu0 }
 0x15f   : > { %v2019_v62 = vpop.eup %2018  ;;  %v769_v63 = vsub.f32 %v665_v61, %v2229_v55  ;;  %v667_v0 = vpop.f32.mrb[46].mxu0  ;;  %v934_v1 = vpack.c.bf16 %v2017_v59, %v2013_v56 }
 0x160   : > { %v876_v2 = vmul.f32 1.442695, %v768_v60  ;;  %v770_v3 = vsub.f32 %v667_v0, %v2227_v54  ;;  %v669_v4 = vpop.f32.mrb[47].mxu0  ;;  %v935_v5 = vpack.c.bf16 %v2019_v62, %v2015_v57 }
 0x161   : > { %v878_v6 = vmul.f32 1.442695, %v769_v63  ;;  %v771_v7 = vsub.f32 %v669_v4, %v2229_v55 }
 0x162   : > { %2028 = vpow2.f32 %v876_v2  ;;  %v880_v8 = vmul.f32 1.442695, %v770_v3  ;;  %1180 = vmatprep.mubr.bf16.mxu1 %v935_v5 }
 0x163   : > { %2030 = vpow2.f32 %v878_v6  ;;  %v882_v9 = vmul.f32 1.442695, %v771_v7  ;;  %1181 = vmatmul.mubr.bf16.gmra.mrb[36].mxu1 %v934_v1 }
 0x164   : > { %v2021_v10 = vpop.eup %2020  ;;  %2032 = vpow2.f32 %v880_v8 }
 0x165   : > { %v2023_v11 = vpop.eup %2022  ;;  %2034 = vpow2.f32 %v882_v9  ;;  %v673_v12 = vpop.f32.mrb[48].mxu0 }
 0x166   : > { %v2025_v13 = vpop.eup %2024  ;;  %v772_v14 = vsub.f32 %v673_v12, %v2227_v54  ;;  %v675_v15 = vpop.f32.mrb[49].mxu0 }
 0x167   : > { %v2027_v16 = vpop.eup %2026  ;;  %v773_v17 = vsub.f32 %v675_v15, %v2229_v55  ;;  %v677_v18 = vpop.f32.mrb[50].mxu0  ;;  %v936_v19 = vpack.c.bf16 %v2025_v13, %v2021_v10 }
 0x168   : > { %v884_v20 = vmul.f32 1.442695, %v772_v14  ;;  %v774_v21 = vsub.f32 %v677_v18, %v2227_v54  ;;  %v679_v22 = vpop.f32.mrb[51].mxu0  ;;  %v937_v23 = vpack.c.bf16 %v2027_v16, %v2023_v11 }
 0x169   : > { %v886_v24 = vmul.f32 1.442695, %v773_v17  ;;  %v775_v25 = vsub.f32 %v679_v22, %v2229_v55 }
 0x16a   : > { %2036 = vpow2.f32 %v884_v20  ;;  %v888_v26 = vmul.f32 1.442695, %v774_v21  ;;  %1188 = vmatprep.mubr.bf16.mxu1 %v937_v23 }
 0x16b   : > { %2038 = vpow2.f32 %v886_v24  ;;  %v890_v27 = vmul.f32 1.442695, %v775_v25  ;;  %1189 = vmatmul.mubr.bf16.gmra.mrb[40].mxu1 %v936_v19 }
 0x16c   : > { %v2029_v28 = vpop.eup %2028  ;;  %2040 = vpow2.f32 %v888_v26 }
 0x16d   : > { %v2031_v29 = vpop.eup %2030  ;;  %2042 = vpow2.f32 %v890_v27  ;;  %v683_v30 = vpop.f32.mrb[52].mxu0 }
 0x16e   : > { %v2033_v31 = vpop.eup %2032  ;;  %v776_v32 = vsub.f32 %v683_v30, %v2227_v54  ;;  %v685_v33 = vpop.f32.mrb[53].mxu0 }
 0x16f   : > { %v2035_v34 = vpop.eup %2034  ;;  %v777_v35 = vsub.f32 %v685_v33, %v2229_v55  ;;  %v687_v36 = vpop.f32.mrb[54].mxu0  ;;  %v938_v37 = vpack.c.bf16 %v2033_v31, %v2029_v28 }
 0x170   : > { %v892_v38 = vmul.f32 1.442695, %v776_v32  ;;  %v778_v39 = vsub.f32 %v687_v36, %v2227_v54  ;;  %v689_v40 = vpop.f32.mrb[55].mxu0  ;;  %v939_v41 = vpack.c.bf16 %v2035_v34, %v2031_v29 }
 0x171   : > { %v894_v42 = vmul.f32 1.442695, %v777_v35  ;;  %v779_v43 = vsub.f32 %v689_v40, %v2229_v55 }
 0x172   : > { %2044 = vpow2.f32 %v892_v38  ;;  %v896_v44 = vmul.f32 1.442695, %v778_v39  ;;  %1196 = vmatprep.mubr.bf16.mxu1 %v939_v41 }
 0x173   : > { %2046 = vpow2.f32 %v894_v42  ;;  %v898_v45 = vmul.f32 1.442695, %v779_v43  ;;  %1197 = vmatmul.mubr.bf16.gmra.mrb[44].mxu1 %v938_v37 }
 0x174   : > { %v2037_v46 = vpop.eup %2036  ;;  %2048 = vpow2.f32 %v896_v44 }
 0x175   : > { %v2039_v47 = vpop.eup %2038  ;;  %2050 = vpow2.f32 %v898_v45  ;;  %v693_v48 = vpop.f32.mrb[56].mxu0 }
 0x176   : > { %v2041_v49 = vpop.eup %2040  ;;  %v780_v50 = vsub.f32 %v693_v48, %v2227_v54  ;;  %v695_v51 = vpop.f32.mrb[57].mxu0 }
 0x177   : > { %v2043_v52 = vpop.eup %2042  ;;  %v781_v53 = vsub.f32 %v695_v51, %v2229_v55  ;;  %v697_v56 = vpop.f32.mrb[58].mxu0  ;;  %v940_v57 = vpack.c.bf16 %v2041_v49, %v2037_v46 }
 0x178   : > { %v900_v58 = vmul.f32 1.442695, %v780_v50  ;;  %v782_v59 = vsub.f32 %v697_v56, %v2227_v54  ;;  %v699_v60 = vpop.f32.mrb[59].mxu0  ;;  %v941_v61 = vpack.c.bf16 %v2043_v52, %v2039_v47 }
 0x179   : > { %v902_v62 = vmul.f32 1.442695, %v781_v53  ;;  %v783_v63 = vsub.f32 %v699_v60, %v2229_v55 }
 0x17a   : > { %2052 = vpow2.f32 %v900_v58  ;;  %v904_v0 = vmul.f32 1.442695, %v782_v59  ;;  %1204 = vmatprep.mubr.bf16.mxu1 %v941_v61 }
 0x17b   : > { %2054 = vpow2.f32 %v902_v62  ;;  %v906_v1 = vmul.f32 1.442695, %v783_v63  ;;  %1205 = vmatmul.mubr.bf16.gmra.mrb[48].mxu1 %v940_v57 }
 0x17c   : > { %v2045_v2 = vpop.eup %2044  ;;  %2056 = vpow2.f32 %v904_v0 }
 0x17d   : > { %v2047_v3 = vpop.eup %2046  ;;  %2058 = vpow2.f32 %v906_v1  ;;  %v703_v4 = vpop.f32.mrb[60].mxu0 }
 0x17e   : > { %v2049_v5 = vpop.eup %2048  ;;  %v784_v6 = vsub.f32 %v703_v4, %v2227_v54  ;;  %v705_v7 = vpop.f32.mrb[61].mxu0 }
 0x17f   : > { %v2051_v8 = vpop.eup %2050  ;;  %v785_v9 = vsub.f32 %v705_v7, %v2229_v55  ;;  %v707_v10 = vpop.f32.mrb[62].mxu0  ;;  %v942_v11 = vpack.c.bf16 %v2049_v5, %v2045_v2 }
 0x180   : > { %v908_v12 = vmul.f32 1.442695, %v784_v6  ;;  %v786_v13 = vsub.f32 %v707_v10, %v2227_v54  ;;  %v709_v14 = vpop.f32.mrb[63].mxu0  ;;  %v943_v15 = vpack.c.bf16 %v2051_v8, %v2047_v3 }
 0x181   : > { %v910_v16 = vmul.f32 1.442695, %v785_v9  ;;  %v787_v17 = vsub.f32 %v709_v14, %v2229_v55 }
 0x182   : > { %2060 = vpow2.f32 %v908_v12  ;;  %v912_v18 = vmul.f32 1.442695, %v786_v13  ;;  %1212 = vmatprep.mubr.bf16.mxu1 %v943_v15 }
 0x183   : > { %2062 = vpow2.f32 %v910_v16  ;;  %v914_v19 = vmul.f32 1.442695, %v787_v17  ;;  %1213 = vmatmul.mubr.bf16.gmra.mrb[52].mxu1 %v942_v11 }
 0x184   : > { %v2053_v20 = vpop.eup %2052  ;;  %2064 = vpow2.f32 %v912_v18 }
 0x185   : > { %v2055_v21 = vpop.eup %2054  ;;  %2066 = vpow2.f32 %v914_v19 }
 0x186   : > { %v2057_v22 = vpop.eup %2056 }
 0x187   : > { %v2059_v23 = vpop.eup %2058  ;;  %v944_v24 = vpack.c.bf16 %v2057_v22, %v2053_v20 }
 0x188   : > { %v945_v25 = vpack.c.bf16 %v2059_v23, %v2055_v21 }
 0x18a   : > { %1220 = vmatprep.mubr.bf16.mxu1 %v945_v25 }
 0x18b   : > { %1221 = vmatmul.mubr.bf16.gmra.mrb[56].mxu1 %v944_v24 }
 0x18c   : > { %v2061_v54 = vpop.eup %2060 }
 0x18d   : > { %v2063_v26 = vpop.eup %2062 }
 0x18e   : > { %v2065_v55 = vpop.eup %2064 }
 0x18f   : > { %v2067_v27 = vpop.eup %2066  ;;  %v946_v28 = vpack.c.bf16 %v2065_v55, %v2061_v54 }
 0x190   : > { %v947_v29 = vpack.c.bf16 %v2067_v27, %v2063_v26 }
 0x192   : > { %1228 = vmatprep.mubr.bf16.mxu1 %v947_v29 }
 0x193   : > { %1229 = vmatmul.mubr.bf16.gmra.mrb[60].mxu1 %v946_v28 }
 0x1ee   : > { %v1763_v30 = vpop.f32.mrb[0].mxu1 }
 0x1ef   : > { %v1764_v31 = vpop.f32.mrb[1].mxu1 }
 0x1f0   : > { %v1765_v32 = vadd.f32 %v1764_v31, %v1763_v30  ;;  %v1766_v33 = vpop.f32.mrb[2].mxu1 }
 0x1f1   : > { %v1767_v34 = vpop.f32.mrb[3].mxu1 }
 0x1f2   : > { %v1768_v35 = vadd.f32 %v1767_v34, %v1766_v33 }
 0x1f4   : > { %v1655_v36 = vpack.c.bf16 %v1768_v35, %v1765_v32 }
 0x1f6   : > { %1656 = vst [vmem:[%s2299_s9] sm:$0xff] %v1655_v36   ;;  %v1769_v37 = vpop.f32.mrb[4].mxu1 }
 0x1f7   : > { %v1770_v38 = vpop.f32.mrb[5].mxu1 }
 0x1f8   : > { %v1771_v39 = vadd.f32 %v1770_v38, %v1769_v37  ;;  %v1772_v40 = vpop.f32.mrb[6].mxu1 }
 0x1f9   : > { %v1773_v41 = vpop.f32.mrb[7].mxu1 }
 0x1fa   : > { %v1774_v42 = vadd.f32 %v1773_v41, %v1772_v40 }
 0x1fc   : > { %v1660_v43 = vpack.c.bf16 %v1774_v42, %v1771_v39 }
 0x1fe   : > { %1732 = vst [vmem:[%s2299_s9 + $0x8] sm:$0xff] %v1660_v43   ;;  %v1775_v44 = vpop.f32.mrb[8].mxu1 }
 0x1ff   : > { %v1776_v45 = vpop.f32.mrb[9].mxu1 }
 0x200   : > { %v1777_v46 = vadd.f32 %v1776_v45, %v1775_v44  ;;  %v1778_v47 = vpop.f32.mrb[10].mxu1 }
 0x201   : > { %v1779_v48 = vpop.f32.mrb[11].mxu1 }
 0x202   : > { %v1780_v49 = vadd.f32 %v1779_v48, %v1778_v47 }
 0x204   : > { %v1665_v50 = vpack.c.bf16 %v1780_v49, %v1777_v46 }
 0x206   : > { %1733 = vst [vmem:[%s2299_s9 + $0x10] sm:$0xff] %v1665_v50   ;;  %v1781_v51 = vpop.f32.mrb[12].mxu1 }
 0x207   : > { %v1782_v52 = vpop.f32.mrb[13].mxu1 }
 0x208   : > { %v1783_v53 = vadd.f32 %v1782_v52, %v1781_v51  ;;  %v1784_v56 = vpop.f32.mrb[14].mxu1 }
 0x209   : > { %v1785_v57 = vpop.f32.mrb[15].mxu1 }
 0x20a   : > { %v1786_v58 = vadd.f32 %v1785_v57, %v1784_v56 }
 0x20c   : > { %v1670_v59 = vpack.c.bf16 %v1786_v58, %v1783_v53 }
 0x20e   : > { %1734 = vst [vmem:[%s2299_s9 + $0x18] sm:$0xff] %v1670_v59   ;;  %v1787_v60 = vpop.f32.mrb[16].mxu1 }
 0x20f   : > { %v1788_v61 = vpop.f32.mrb[17].mxu1 }
 0x210   : > { %v1789_v62 = vadd.f32 %v1788_v61, %v1787_v60  ;;  %v1790_v63 = vpop.f32.mrb[18].mxu1 }
 0x211   : > { %v1791_v0 = vpop.f32.mrb[19].mxu1 }
 0x212   : > { %v1792_v1 = vadd.f32 %v1791_v0, %v1790_v63 }
 0x214   : > { %v1675_v2 = vpack.c.bf16 %v1792_v1, %v1789_v62 }
 0x216   : > { %1735 = vst [vmem:[%s2299_s9 + $0x20] sm:$0xff] %v1675_v2   ;;  %v1793_v3 = vpop.f32.mrb[20].mxu1 }
 0x217   : > { %v1794_v4 = vpop.f32.mrb[21].mxu1 }
 0x218   : > { %v1795_v5 = vadd.f32 %v1794_v4, %v1793_v3  ;;  %v1796_v6 = vpop.f32.mrb[22].mxu1 }
 0x219   : > { %v1797_v7 = vpop.f32.mrb[23].mxu1 }
 0x21a   : > { %v1798_v8 = vadd.f32 %v1797_v7, %v1796_v6 }
 0x21c   : > { %v1680_v9 = vpack.c.bf16 %v1798_v8, %v1795_v5 }
 0x21e   : > { %1736 = vst [vmem:[%s2299_s9 + $0x28] sm:$0xff] %v1680_v9   ;;  %v1799_v10 = vpop.f32.mrb[24].mxu1 }
 0x21f   : > { %v1800_v11 = vpop.f32.mrb[25].mxu1 }
 0x220   : > { %v1801_v12 = vadd.f32 %v1800_v11, %v1799_v10  ;;  %v1802_v13 = vpop.f32.mrb[26].mxu1 }
 0x221   : > { %v1803_v14 = vpop.f32.mrb[27].mxu1 }
 0x222   : > { %v1804_v15 = vadd.f32 %v1803_v14, %v1802_v13 }
 0x224   : > { %v1685_v16 = vpack.c.bf16 %v1804_v15, %v1801_v12 }
 0x226   : > { %1737 = vst [vmem:[%s2299_s9 + $0x30] sm:$0xff] %v1685_v16   ;;  %v1805_v17 = vpop.f32.mrb[28].mxu1 }
 0x227   : > { %v1806_v18 = vpop.f32.mrb[29].mxu1 }
 0x228   : > { %v1807_v19 = vadd.f32 %v1806_v18, %v1805_v17  ;;  %v1808_v20 = vpop.f32.mrb[30].mxu1 }
 0x229   : > { %v1809_v21 = vpop.f32.mrb[31].mxu1 }
 0x22a   : > { %v1810_v22 = vadd.f32 %v1809_v21, %v1808_v20 }
 0x22c   : > { %v1690_v23 = vpack.c.bf16 %v1810_v22, %v1807_v19 }
 0x22e   : > { %1738 = vst [vmem:[%s2299_s9 + $0x38] sm:$0xff] %v1690_v23   ;;  %v1811_v24 = vpop.f32.mrb[32].mxu1 }
 0x22f   : > { %v1812_v25 = vpop.f32.mrb[33].mxu1 }
 0x230   : > { %v1813_v54 = vadd.f32 %v1812_v25, %v1811_v24  ;;  %v1814_v26 = vpop.f32.mrb[34].mxu1 }
 0x231   : > { %v1815_v55 = vpop.f32.mrb[35].mxu1 }
 0x232   : > { %v1816_v27 = vadd.f32 %v1815_v55, %v1814_v26 }
 0x234   : > { %v1695_v28 = vpack.c.bf16 %v1816_v27, %v1813_v54 }
 0x236   : > { %1739 = vst [vmem:[%s2299_s9 + $0x40] sm:$0xff] %v1695_v28   ;;  %v1817_v29 = vpop.f32.mrb[36].mxu1 }
 0x237   : > { %v1818_v30 = vpop.f32.mrb[37].mxu1 }
 0x238   : > { %v1819_v31 = vadd.f32 %v1818_v30, %v1817_v29  ;;  %v1820_v32 = vpop.f32.mrb[38].mxu1 }
 0x239   : > { %v1821_v33 = vpop.f32.mrb[39].mxu1 }
 0x23a   : > { %v1822_v34 = vadd.f32 %v1821_v33, %v1820_v32 }
 0x23c   : > { %v1700_v35 = vpack.c.bf16 %v1822_v34, %v1819_v31 }
 0x23e   : > { %1740 = vst [vmem:[%s2299_s9 + $0x48] sm:$0xff] %v1700_v35   ;;  %v1823_v36 = vpop.f32.mrb[40].mxu1 }
 0x23f   : > { %v1824_v37 = vpop.f32.mrb[41].mxu1 }
 0x240   : > { %v1825_v38 = vadd.f32 %v1824_v37, %v1823_v36  ;;  %v1826_v39 = vpop.f32.mrb[42].mxu1 }
 0x241   : > { %v1827_v40 = vpop.f32.mrb[43].mxu1 }
 0x242   : > { %v1828_v41 = vadd.f32 %v1827_v40, %v1826_v39 }
 0x244   : > { %v1705_v42 = vpack.c.bf16 %v1828_v41, %v1825_v38 }
 0x246   : > { %1741 = vst [vmem:[%s2299_s9 + $0x50] sm:$0xff] %v1705_v42   ;;  %v1829_v43 = vpop.f32.mrb[44].mxu1 }
 0x247   : > { %v1830_v44 = vpop.f32.mrb[45].mxu1 }
 0x248   : > { %v1831_v45 = vadd.f32 %v1830_v44, %v1829_v43  ;;  %v1832_v46 = vpop.f32.mrb[46].mxu1 }
 0x249   : > { %v1833_v47 = vpop.f32.mrb[47].mxu1 }
 0x24a   : > { %v1834_v48 = vadd.f32 %v1833_v47, %v1832_v46 }
 0x24c   : > { %v1710_v49 = vpack.c.bf16 %v1834_v48, %v1831_v45 }
 0x24e   : > { %1742 = vst [vmem:[%s2299_s9 + $0x58] sm:$0xff] %v1710_v49   ;;  %v1835_v50 = vpop.f32.mrb[48].mxu1 }
 0x24f   : > { %v1836_v51 = vpop.f32.mrb[49].mxu1 }
 0x250   : > { %v1837_v52 = vadd.f32 %v1836_v51, %v1835_v50  ;;  %v1838_v53 = vpop.f32.mrb[50].mxu1 }
 0x251   : > { %v1839_v56 = vpop.f32.mrb[51].mxu1 }
 0x252   : > { %v1840_v57 = vadd.f32 %v1839_v56, %v1838_v53 }
 0x254   : > { %v1715_v58 = vpack.c.bf16 %v1840_v57, %v1837_v52 }
 0x256   : > { %1743 = vst [vmem:[%s2299_s9 + $0x60] sm:$0xff] %v1715_v58   ;;  %v1841_v59 = vpop.f32.mrb[52].mxu1 }
 0x257   : > { %v1842_v60 = vpop.f32.mrb[53].mxu1 }
 0x258   : > { %v1843_v61 = vadd.f32 %v1842_v60, %v1841_v59  ;;  %v1844_v62 = vpop.f32.mrb[54].mxu1 }
 0x259   : > { %v1845_v63 = vpop.f32.mrb[55].mxu1 }
 0x25a   : > { %v1846_v0 = vadd.f32 %v1845_v63, %v1844_v62 }
 0x25c   : > { %v1720_v1 = vpack.c.bf16 %v1846_v0, %v1843_v61 }
 0x25e   : > { %1744 = vst [vmem:[%s2299_s9 + $0x68] sm:$0xff] %v1720_v1   ;;  %v1847_v2 = vpop.f32.mrb[56].mxu1 }
 0x25f   : > { %v1848_v3 = vpop.f32.mrb[57].mxu1 }
 0x260   : > { %v1849_v4 = vadd.f32 %v1848_v3, %v1847_v2  ;;  %v1850_v5 = vpop.f32.mrb[58].mxu1 }
 0x261   : > { %v1851_v6 = vpop.f32.mrb[59].mxu1 }
 0x262   : > { %v1852_v7 = vadd.f32 %v1851_v6, %v1850_v5 }
 0x264   : > { %v1725_v8 = vpack.c.bf16 %v1852_v7, %v1849_v4 }
 0x266   : > { %1745 = vst [vmem:[%s2299_s9 + $0x70] sm:$0xff] %v1725_v8   ;;  %v1853_v9 = vpop.f32.mrb[60].mxu1 }
 0x267   : > { %v1854_v10 = vpop.f32.mrb[61].mxu1 }
 0x268   : > { %v1855_v11 = vadd.f32 %v1854_v10, %v1853_v9  ;;  %v1856_v12 = vpop.f32.mrb[62].mxu1 }
 0x269   : > { %v1857_v13 = vpop.f32.mrb[63].mxu1 }
 0x26a   : > { %v1858_v14 = vadd.f32 %v1857_v13, %v1856_v12 }
 0x26c   : > { %v1730_v15 = vpack.c.bf16 %v1858_v14, %v1855_v11 }
 0x26e   : > { %1746 = vst [vmem:[%s2299_s9 + $0x78] sm:$0xff] %v1730_v15  }
 0x26f PF: > { %s14_s17 = sadd.s32 1, %s2090_s17   ;;  %s2331_s15 = smov %s2086_s16 }
 0x270   : > { %p11_p5 = scmp.ge.s32.totalorder %s14_s17, 4   ;;  %s2332_s16 = smov %s2334_s18 }
 0x272   :  { %13 = sbr.rel (!%p11_p5) target bundleno = 2 (0x2), region = 75 }

// kernel: non_local_block.7
= control target key start
LH: loop header
LB: loop body
LE: loop exit
PB: predicated region body
PF: predicated region fallthrough
CT: control target
= control target key end

     0   :  { %s619_s15 = smov 0   ;;  %s621_s16 = smov 0   ;;  %s677_s0 = inlined_call_operand.vmem [shape: bf16[2,16,256], index: 0, kind: input, shape index: {}]   ;;  %s678_s1 = inlined_call_operand.vmem [shape: f32[2,32,256], index: 1, kind: input, shape index: {}]   ;;  %s679_s2 = inlined_call_operand.vmem [shape: bf16[32,16], index: 2, kind: input, shape index: {}]   ;;  %s680_s3 = inlined_call_operand.vmem [shape: f32[32,1], index: 3, kind: input, shape index: {}]   ;;  %s681_s4 = inlined_call_operand.vmem [shape: f32[2,32,256], index: 4, kind: output, shape index: {}]  }
   0x1   :  { %s623_s17 = smov 0  }
   0x2 LB: > { %s26_s18 = sadd.s32 1, %s587_s16  ;;  %p517_p0 = scmp.ge.s32.totalorder %s591_s17, 1  ;;  %s591_s17 = sphi %s623_s17, %s14_s17   ;;  %s587_s16 = sphi %s621_s16, %s683_s16   ;;  %s583_s15 = sphi %s619_s15, %s682_s15  }
   0x3   : > { %p28_p1 = scmp.ge.s32.totalorder %s26_s18, 2  ;;  %p200_p2 = scmp.lt.s32.totalorder %s591_s17, 3 }
   0x5   : > { %s685_s18 = smov (%p28_p1, %s26_s18), 0  ;;  %p201_p3 = pnand %p517_p0, %p200_p2 }
   0x6   : > { %p244_p4 = scmp.lt.s32.totalorder (!%p201_p3), %s583_s15, 1  ;;  %v593_v0 = vmov (!%p201_p3), 0   ;;  %v282_v1 = vld [vmem:[%s680_s3 + $0x10] sm:$0xff] (!%p201_p3)  ;;  %v280_v2 = vld [vmem:[%s680_s3] sm:$0xff] (!%p201_p3)  ;;  %v283_v3 = vld [vmem:[%s680_s3 + $0x18] sm:$0xff] (!%p201_p3)  ;;  %vm324_vm0 = vcmask (!%p201_p3), 130048  }
   0x7   : > { %204 = sbr.rel (%p201_p3) target bundleno = 242 (0xf2), region = 36  ;;  %363 = vmatprep.mubr.bf16.mxu0 (!%p201_p3), %v593_v0  ;;  %373 = vmatprep.mubr.bf16.mxu1 (!%p201_p3), %v593_v0  ;;  %v281_v4 = vld [vmem:[%s680_s3 + $0x8] sm:$0xff] (!%p201_p3)  ;;  %v567_v7 = vld [vmem:[%s679_s2] sm:$0xff] (!%p201_p3)  }
   0x8   : > { %563 = vset.pattern.permute.xlu1 (!%p201_p3), %v593_v0  ;;  %562 = vset.pattern.permute.xlu0 (!%p201_p3), %v593_v0  ;;  %v568_v8 = vld [vmem:[%s679_s2 + $0x8] sm:$0xff] (!%p201_p3)  }
   0x9   : > { %296 = vperm.xlu1 (!%p201_p3), %563, %v282_v1   ;;  %286 = vperm.xlu0 (!%p201_p3), %562, %v280_v2  }
   0xd   : > { %301 = vperm.xlu1 (!%p201_p3), %563, %v283_v3   ;;  %291 = vperm.xlu0 (!%p201_p3), %562, %v281_v4  }
   0xe   : > { %s687_s15 = smov (!%p244_p4, %s583_s15), 1 }
   0xf   : > { %s532_s23 = sshll.u32 %s687_s15, 4  ;;  %s533_s9 = sshll.u32 %s687_s15, 6 }
  0x10   : > { %s251_s30 = scalar_lea.vmem %s677_s0, %s532_s23  ;;  %s261_s12 = scalar_lea.vmem %s678_s1, %s533_s9 }
  0x11   : > { %v564_v5 = vld [vmem:[%s251_s30 + $0x4] ss:$8 sps:$4 sm:$0xff]   ;;  %v566_v6 = vld [vmem:[%s251_s30] ss:$8 sps:$4 sm:$0xff]   ;;  %s271_s15 = scalar_lea.vmem %s681_s4, %s533_s9  ;;  %v386_v26 = vld [vmem:[%s261_s12 + $0x10] sm:$0xff] }
  0x12   : > { %331 = vmatprep.subr.bf16.mxu0 %v564_v5  ;;  %535 = vmatprep.subr.bf16.mxu1 %v564_v5  ;;  %v384_v14 = vld [vmem:[%s261_s12] sm:$0xff]  ;;  %v385_v20 = vld [vmem:[%s261_s12 + $0x8] sm:$0xff]  ;;  %v390_v28 = vld [vmem:[%s261_s12 + $0x30] sm:$0xff] }
  0x13   : > { %332 = vmatpush1.bf16.msra.mxu0 %v566_v6  ;;  %536 = vmatpush1.bf16.msra.mxu1 %v566_v6  ;;  %v388_v16 = vld [vmem:[%s261_s12 + $0x20] sm:$0xff]  ;;  %v389_v22 = vld [vmem:[%s261_s12 + $0x28] sm:$0xff]  ;;  %v387_v34 = vld [vmem:[%s261_s12 + $0x18] sm:$0xff] }
  0x14   : > { %v391_v36 = vld [vmem:[%s261_s12 + $0x38] sm:$0xff] }
  0x16   : > { %528 = vmatmul.mubr.msk.bf16.vlgmr.msra.gmra.mrb[0].mxu0 %vm324_vm0, %v567_v7  ;;  %529 = vmatmul.mubr.msk.bf16.vlgmr.msra.gmra.mrb[0].mxu1 %vm324_vm0, %v568_v8 }
  0x88   : > { %v297_v9 = vpop.permute.xlu1 %296  ;;  %v287_v10 = vpop.permute.xlu0 %286 }
  0x8c   : > { %v302_v11 = vpop.permute.xlu1 %301  ;;  %v292_v12 = vpop.permute.xlu0 %291 }
  0xe9   : > { %v365_v13 = vpop.f32.mrb[0].mxu0  ;;  %v375_v15 = vpop.f32.mrb[0].mxu1 }
  0xea   : > { %v366_v17 = vadd.f32 %v365_v13, %v287_v10  ;;  %v376_v18 = vadd.f32 %v375_v15, %v297_v9  ;;  %v367_v19 = vpop.f32.mrb[1].mxu0  ;;  %v377_v21 = vpop.f32.mrb[1].mxu1 }
  0xeb   : > { %v368_v23 = vadd.f32 %v367_v19, %v287_v10  ;;  %v378_v24 = vadd.f32 %v377_v21, %v297_v9  ;;  %v369_v25 = vpop.f32.mrb[2].mxu0  ;;  %v379_v27 = vpop.f32.mrb[2].mxu1 }
  0xec   : > { %v392_v29 = vadd.f32 %v384_v14, %v366_v17  ;;  %v396_v30 = vadd.f32 %v388_v16, %v376_v18  ;;  %v370_v31 = vadd.f32 %v369_v25, %v292_v12  ;;  %v380_v32 = vadd.f32 %v379_v27, %v302_v11  ;;  %v371_v33 = vpop.f32.mrb[3].mxu0  ;;  %v381_v35 = vpop.f32.mrb[3].mxu1 }
  0xed   : > { %v393_v37 = vadd.f32 %v385_v20, %v368_v23  ;;  %v397_v38 = vadd.f32 %v389_v22, %v378_v24  ;;  %v372_v39 = vadd.f32 %v371_v33, %v292_v12  ;;  %v382_v40 = vadd.f32 %v381_v35, %v302_v11 }
  0xee   : > { %400 = vst [vmem:[%s271_s15] sm:$0xff] %v392_v29  ;;  %404 = vst [vmem:[%s271_s15 + $0x20] sm:$0xff] %v396_v30  ;;  %v394_v41 = vadd.f32 %v386_v26, %v370_v31  ;;  %v398_v42 = vadd.f32 %v390_v28, %v380_v32 }
  0xef   : > { %401 = vst [vmem:[%s271_s15 + $0x8] sm:$0xff] %v393_v37  ;;  %405 = vst [vmem:[%s271_s15 + $0x28] sm:$0xff] %v397_v38  ;;  %v395_v43 = vadd.f32 %v387_v34, %v372_v39  ;;  %v399_v44 = vadd.f32 %v391_v36, %v382_v40 }
  0xf0   : > { %402 = vst [vmem:[%s271_s15 + $0x10] sm:$0xff] %v394_v41  ;;  %406 = vst [vmem:[%s271_s15 + $0x30] sm:$0xff] %v398_v42 }
  0xf1   : > { %403 = vst [vmem:[%s271_s15 + $0x18] sm:$0xff] %v395_v43  ;;  %407 = vst [vmem:[%s271_s15 + $0x38] sm:$0xff] %v399_v44 }
  0xf2 PF: > { %s14_s17 = sadd.s32 1, %s591_s17   ;;  %s682_s15 = smov %s587_s16 }
  0xf3   : > { %p11_p5 = scmp.ge.s32.totalorder %s14_s17, 4   ;;  %s683_s16 = smov %s685_s18 }
  0xf5   :  { %13 = sbr.rel (!%p11_p5) target bundleno = 2 (0x2), region = 69 }

</bundles_post_ra>
